<compile_context>
chip_gen: v7x
topology: tpu7x:2x2x1
jax: 0.10.0
libtpu: 0.0.40
codegen_flags: <defaults>
</compile_context>

<pallas_src>
import jax
import jax.numpy as jnp
from jax.experimental import pallas as pl
from jax.experimental.pallas import tpu as pltpu


_INPUT_BUFFER_BUDGET = 8 * 1024 * 1024   # target bytes per (double-buffered) x tile
_VMEM_LIMIT_BYTES = 48 * 1024 * 1024     # <= v7x's 64 MiB physical, > v5e's 16 MiB default


def _head_kernel(x_ref, wa_ref, wm_ref, b_ref, o_ref):
    """One (magnification, batch-tile) grid step.

    x_ref:  [TB, HW, C]  backbone feature maps (bf16), spatial flattened, C lane-dense
    wa_ref: [C, FC_OUT]  BN-folded fc1 weight, avg-pool half (bf16)
    wm_ref: [C, FC_OUT]  BN-folded fc1 weight, max-pool half (bf16)
    b_ref:  [1, FC_OUT]  BN-folded fc1 bias (f32)
    o_ref:  [TB, FC_OUT] relu(fc1(bn(cat(avg_pool, max_pool)))) for this magnification
    """
    x = x_ref[...]
    avg = jnp.mean(x.astype(jnp.float32), axis=1)   # [TB, C] f32-accumulated mean
    mx = jnp.max(x, axis=1)                         # [TB, C] max is exact in bf16
    # Two K=C dots (bf16 MXU, f32 accumulate).  Kernel is DMA-bound, so the extra
    # accumulate per step is noise; keeping the halves separate avoids an
    # in-kernel lane concat of the pooled activations.
    acc = jnp.dot(avg.astype(jnp.bfloat16), wa_ref[...],
                  preferred_element_type=jnp.float32)
    acc += jnp.dot(mx, wm_ref[...], preferred_element_type=jnp.float32)
    acc += b_ref[...]
    o_ref[...] = jnp.maximum(acc, 0.0).astype(o_ref.dtype)


def fold_bn_into_fc1(gamma, beta, running_mean, running_var, fc1_w, fc1_b,
                     eps=1e-5):
    """Fold eval-mode BatchNorm1d into fc1; split into avg/max halves.

    Done once, outside the jitted hot path (parameters are constant across calls).
    """
    scale = gamma / jnp.sqrt(running_var + eps)        # [2C]
    shift = beta - running_mean * scale                # [2C]
    w_t = fc1_w.T                                      # [2C, FC_OUT]
    w_fold = scale[:, None] * w_t                      # BN scale folded into weight
    b_fold = fc1_b + shift @ w_t                       # BN shift folded into bias
    c = w_fold.shape[0] // 2
    wa = w_fold[:c].astype(jnp.bfloat16)               # avg-pool half
    wm = w_fold[c:].astype(jnp.bfloat16)               # max-pool half
    return wa, wm, b_fold.reshape(1, -1).astype(jnp.float32)


def _round_up(x, n):
    return (x + n - 1) // n * n


def _pick_batch_tile(b_pad8, hw, c, itemsize, m):
    """VMEM-budget-aware batch tile: multiple of 8, ~<=8 MiB per input buffer."""
    bytes_per_row = hw * c * itemsize
    tb = max(8, min(b_pad8, (_INPUT_BUFFER_BUDGET // max(bytes_per_row, 1)) // 8 * 8))
    n_bt = pl.cdiv(b_pad8, tb)
    # v7x has 2 TensorCores: prefer an even number of parallel grid steps so both
    # cores get balanced work (split the batch rather than relying on m alone).
    if b_pad8 >= 16 and (m * n_bt) % 2 == 1:
        tb = max(8, _round_up(pl.cdiv(b_pad8, 2 * n_bt), 8))
    return tb


@jax.jit
def ftrs_shared_head_forward(feats, wa, wm, b2):
    """feats: [M, B, HW, C] bf16 backbone feature maps (channels last / NHWC).

    Returns [B, M * FC_OUT] f32 -- identical ordering to torch.cat(ftrs, 1).
    """
    m, batch, hw, c = feats.shape
    fc_out = wa.shape[1]

    tb = _pick_batch_tile(_round_up(batch, 8), hw, c, feats.dtype.itemsize, m)
    b_pad = _round_up(batch, tb)
    if b_pad != batch:
        # Padded rows produce garbage output rows; they are sliced off below.
        feats = jnp.pad(feats, ((0, 0), (0, b_pad - batch), (0, 0), (0, 0)))
    n_bt = b_pad // tb

    cost = pl.CostEstimate(
        flops=2 * m * b_pad * hw * c + 2 * m * b_pad * (2 * c) * fc_out,
        transcendentals=0,
        bytes_accessed=(m * b_pad * hw * c * feats.dtype.itemsize
                        + (wa.size + wm.size) * 2 + b2.size * 4
                        + b_pad * m * fc_out * 4),
    )

    out = pl.pallas_call(
        _head_kernel,
        out_shape=jax.ShapeDtypeStruct((b_pad, m * fc_out), jnp.float32),
        grid=(m, n_bt),
        in_specs=[
            pl.BlockSpec((None, tb, hw, c), lambda mi, bi: (mi, bi, 0, 0)),
            pl.BlockSpec((c, fc_out), lambda mi, bi: (0, 0)),
            pl.BlockSpec((c, fc_out), lambda mi, bi: (0, 0)),
            pl.BlockSpec((1, fc_out), lambda mi, bi: (0, 0)),
        ],
        out_specs=pl.BlockSpec((tb, fc_out), lambda mi, bi: (bi, mi)),
        compiler_params=pltpu.CompilerParams(
            dimension_semantics=("parallel", "parallel"),
            vmem_limit_bytes=_VMEM_LIMIT_BYTES),
        cost_estimate=cost,
    )(feats, wa, wm, b2)
    return out[:batch]


if __name__ == "__main__":
    # Ftrs_SharedNet(resnet='resnet18'): backbone channels C=512, num_ftrs=1024,
    # fc1: Linear(1024, 256).  Small demo: num_mags=2, B=5 (exercises the
    # pad-to-tile path), 4x4 feature maps.
    num_mags, B, C, H, W = 2, 5, 512, 4, 4
    HW = H * W
    num_ftrs = 2 * C                 # 1024
    fc_out = num_ftrs // 4           # 256
    eps = 1e-5

    key = jax.random.PRNGKey(0)
    kx, kg, kb, km, kv, kw, kbias = jax.random.split(key, 7)

    # Stand-in for stacked per-magnification backbone outputs, channels-last
    # [M, B, H*W, C] -- a TPU-native backbone emits NHWC directly, so no extra
    # transpose/copy pass is needed before the kernel.
    feat_maps = jax.random.normal(kx, (num_mags, B, HW, C), dtype=jnp.float32)

    gamma = 1.0 + 0.1 * jax.random.normal(kg, (num_ftrs,), dtype=jnp.float32)
    beta = 0.1 * jax.random.normal(kb, (num_ftrs,), dtype=jnp.float32)
    running_mean = 0.05 * jax.random.normal(km, (num_ftrs,), dtype=jnp.float32)
    running_var = 1.0 + 0.1 * jax.random.uniform(kv, (num_ftrs,), dtype=jnp.float32)
    bound = 1.0 / (num_ftrs ** 0.5)
    fc1_w = jax.random.uniform(kw, (fc_out, num_ftrs), dtype=jnp.float32,
                               minval=-bound, maxval=bound)
    fc1_b = jax.random.uniform(kbias, (fc_out,), dtype=jnp.float32,
                               minval=-bound, maxval=bound)

    # One-time parameter folding (BN -> fc1), weights pre-cast to bf16.
    wa, wm, b2 = fold_bn_into_fc1(gamma, beta, running_mean, running_var,
                                  fc1_w, fc1_b, eps=eps)

    # Backbone activations streamed in bf16 (halves HBM traffic for this stage).
    feats = feat_maps.astype(jnp.bfloat16)

    out = ftrs_shared_head_forward(feats, wa, wm, b2)
    out = jax.block_until_ready(out)
    assert out.shape == (B, num_mags * fc_out)

    # Reference: eval-mode BN + avg/max pool + fc1 + ReLU, concat over mags (f32).
    pooled = jnp.concatenate([feat_maps.mean(axis=2), feat_maps.max(axis=2)],
                             axis=-1)                                   # [M, B, 2C]
    bn = (pooled - running_mean) / jnp.sqrt(running_var + eps) * gamma + beta
    ref = jnp.maximum(bn @ fc1_w.T + fc1_b, 0.0)                        # [M, B, 256]
    ref = jnp.transpose(ref, (1, 0, 2)).reshape(B, num_mags * fc_out)

    # bf16 activations + bf16 matmul operands (f32 accumulate) vs an all-f32
    # reference -> loose tolerance by design (inference-grade precision).
    assert jnp.allclose(out, ref, atol=5e-2, rtol=5e-2), \
        float(jnp.max(jnp.abs(out - ref)))

    print("KERNEL_OK")
</pallas_src>

<mosaic_0001>
module attributes {stable_mosaic.version = 11 : i64} {
  func.func @_head_kernel(%arg0: i32, %arg1: i32, %arg2: memref<1x8x16x512xbf16, #tpu.memory_space<vmem>>, %arg3: memref<512x256xbf16, #tpu.memory_space<vmem>>, %arg4: memref<512x256xbf16, #tpu.memory_space<vmem>>, %arg5: memref<1x256xf32, #tpu.memory_space<vmem>>, %arg6: memref<8x256xf32, #tpu.memory_space<vmem>>) attributes {dimension_semantics = [#tpu.dimension_semantics<parallel>, #tpu.dimension_semantics<parallel>], iteration_bounds = array<i64: 2, 1>, scalar_prefetch = 0 : i64, scratch_operands = 0 : i64, tpu.core_type = #tpu.core_type<tc>, window_params = [{transform_indices = @transform_0, window_bounds = array<i64: 1, 8, 16, 512>}, {pipeline_mode = #tpu.pipeline_mode<synchronous>, transform_indices = @transform_1, window_bounds = array<i64: 512, 256>}, {pipeline_mode = #tpu.pipeline_mode<synchronous>, transform_indices = @transform_2, window_bounds = array<i64: 512, 256>}, {pipeline_mode = #tpu.pipeline_mode<synchronous>, transform_indices = @transform_3, window_bounds = array<i64: 1, 256>}, {transform_indices = @transform_4, window_bounds = array<i64: 8, 256>}]} {
    %c0 = arith.constant 0 : index
    %c0_0 = arith.constant 0 : index
    %c0_1 = arith.constant 0 : index
    %c0_2 = arith.constant 0 : index
    %0 = vector.load %arg2[%c0, %c0_0, %c0_1, %c0_2] : memref<1x8x16x512xbf16, #tpu.memory_space<vmem>>, vector<1x8x16x512xbf16>
    %1 = vector.shape_cast %0 : vector<1x8x16x512xbf16> to vector<8x16x512xbf16>
    %2 = arith.extf %1 : vector<8x16x512xbf16> to vector<8x16x512xf32>
    %cst = arith.constant dense<0.000000e+00> : vector<8x512xf32>
    %3 = vector.multi_reduction <add>, %2, %cst [1] : vector<8x16x512xf32> to vector<8x512xf32>
    %cst_3 = arith.constant 1.600000e+01 : f32
    %4 = vector.broadcast %cst_3 : f32 to vector<8x512xf32>
    %5 = arith.divf %3, %4 : vector<8x512xf32>
    %cst_4 = arith.constant dense<0xFF80> : vector<8x512xbf16>
    %6 = vector.multi_reduction <maximumf>, %1, %cst_4 [1] : vector<8x16x512xbf16> to vector<8x512xbf16>
    %7 = arith.truncf %5 : vector<8x512xf32> to vector<8x512xbf16>
    %c0_5 = arith.constant 0 : index
    %c0_6 = arith.constant 0 : index
    %8 = vector.load %arg3[%c0_5, %c0_6] : memref<512x256xbf16, #tpu.memory_space<vmem>>, vector<512x256xbf16>
    %cst_7 = arith.constant dense<0.000000e+00> : vector<8x256xf32>
    %9 = tpu.matmul %7, %8, %cst_7 {dimension_numbers = #tpu.dot_dimension_numbers<[1], [0], [0], [1], [0, 0, 1, 1], [], []>} : vector<8x512xbf16>, vector<512x256xbf16>, vector<8x256xf32> -> vector<8x256xf32>
    %c0_8 = arith.constant 0 : index
    %c0_9 = arith.constant 0 : index
    %10 = vector.load %arg4[%c0_8, %c0_9] : memref<512x256xbf16, #tpu.memory_space<vmem>>, vector<512x256xbf16>
    %cst_10 = arith.constant dense<0.000000e+00> : vector<8x256xf32>
    %11 = tpu.matmul %6, %10, %cst_10 {dimension_numbers = #tpu.dot_dimension_numbers<[1], [0], [0], [1], [0, 0, 1, 1], [], []>} : vector<8x512xbf16>, vector<512x256xbf16>, vector<8x256xf32> -> vector<8x256xf32>
    %12 = arith.addf %9, %11 : vector<8x256xf32>
    %c0_11 = arith.constant 0 : index
    %c0_12 = arith.constant 0 : index
    %13 = vector.load %arg5[%c0_11, %c0_12] : memref<1x256xf32, #tpu.memory_space<vmem>>, vector<1x256xf32>
    %14 = vector.broadcast %13 : vector<1x256xf32> to vector<8x256xf32>
    %15 = arith.addf %12, %14 : vector<8x256xf32>
    %cst_13 = arith.constant 0.000000e+00 : f32
    %16 = vector.broadcast %cst_13 : f32 to vector<8x256xf32>
    %17 = arith.maximumf %15, %16 : vector<8x256xf32>
    %c0_14 = arith.constant 0 : index
    %c0_15 = arith.constant 0 : index
    %18 = vector.load %arg6[%c0_14, %c0_15] : memref<8x256xf32, #tpu.memory_space<vmem>>, vector<8x256xf32>
    tpu.vector_store %arg6[%c0_14, %c0_15], %17 {strides = array<i32>} : memref<8x256xf32, #tpu.memory_space<vmem>>, vector<8x256xf32>,
    return
  }
  func.func @transform_0(%arg0: i32, %arg1: i32) -> (i32, i32, i32, i32) {
    %c0_i32 = arith.constant 0 : i32
    %c0_i32_0 = arith.constant 0 : i32
    %c0_i32_1 = arith.constant 0 : i32
    return %arg0, %arg1, %c0_i32, %c0_i32_0 : i32, i32, i32, i32
  }
  func.func @transform_1(%arg0: i32, %arg1: i32) -> (i32, i32) {
    %c0_i32 = arith.constant 0 : i32
    %c0_i32_0 = arith.constant 0 : i32
    %c0_i32_1 = arith.constant 0 : i32
    return %c0_i32, %c0_i32_0 : i32, i32
  }
  func.func @transform_2(%arg0: i32, %arg1: i32) -> (i32, i32) {
    %c0_i32 = arith.constant 0 : i32
    %c0_i32_0 = arith.constant 0 : i32
    %c0_i32_1 = arith.constant 0 : i32
    return %c0_i32, %c0_i32_0 : i32, i32
  }
  func.func @transform_3(%arg0: i32, %arg1: i32) -> (i32, i32) {
    %c0_i32 = arith.constant 0 : i32
    %c0_i32_0 = arith.constant 0 : i32
    %c0_i32_1 = arith.constant 0 : i32
    return %c0_i32, %c0_i32_0 : i32, i32
  }
  func.func @transform_4(%arg0: i32, %arg1: i32) -> (i32, i32) {
    %c0_i32 = arith.constant 0 : i32
    return %arg1, %arg0 : i32, i32
  }
}

</mosaic_0001>

<bundles_post_ra>
// kernel: ftrs_shared_head_forward.1
= control target key start
LH: loop header
LB: loop body
LE: loop exit
PB: predicated region body
PF: predicated region fallthrough
CT: control target
= control target key end

     0   :  { %9 = vsyncpa [#allocation3], 0  ;;  %s3732_s0 = inlined_call_operand.vmem [shape: bf16[2,8,16,512], index: 0, kind: input, shape index: {}]   ;;  %s3733_s1 = inlined_call_operand.vmem [shape: bf16[512,256], index: 1, kind: input, shape index: {}]   ;;  %s3734_s2 = inlined_call_operand.hbm [shape: bf16[512,256], index: 2, kind: input, shape index: {}]   ;;  %s3735_s3 = inlined_call_operand.vmem [shape: f32[1,256], index: 3, kind: input, shape index: {}]   ;;  %s3736_s4 = inlined_call_operand.hbm [shape: f32[8,512], index: 4, kind: output, shape index: {}]  }
   0x1   :  { %10 = vsyncpa [#allocation4], 0 }
   0x2   :  { %12 = vsyncpa [#allocation4 + $0x1], 0  ;;  %s3017_s15 = smov 0   ;;  %s3019_s16 = smov 0  }
   0x3   :  { %s3021_s17 = smov 0   ;;  %s3023_s18 = smov 0  }
   0x4   :  { %s3025_s19 = smov 0   ;;  %s3027_s20 = smov 0  }
   0x5 LB: > { %s2375_s21 = sadd.s32 4294967295, %s2986_s20   ;;  %s2376_s22 = sadd.s32 4294967294, %s2986_s20   ;;  %s2986_s20 = sphi %s3027_s20, %s18_s20   ;;  %s2982_s19 = sphi %s3025_s19, %s3760_s19   ;;  %s2978_s18 = sphi %s3023_s18, %s3759_s18   ;;  %s2974_s17 = sphi %s3021_s17, %s3758_s17   ;;  %s2970_s16 = sphi %s3019_s16, %s3757_s16   ;;  %s2966_s15 = sphi %s3017_s15, %s3756_s15  }
   0x6   : > { %s30_s23 = sadd.s32 1, %s2982_s19  ;;  %s130_s24 = sadd.s32 1, %s2974_s17 }
   0x7   : > { %p32_p0 = scmp.ge.s32.totalorder %s30_s23, 2  ;;  %p140_p1 = scmp.ne.s32.totalorder %s2974_s17, %s2970_s16 }
   0x8   : > { %p141_p2 = scmp.eq.s32.totalorder %s2375_s21, 1  ;;  %p146_p3 = scmp.ne.s32.totalorder %s2970_s16, %s2966_s15 }
   0x9   : > { %s3762_s23 = smov (%p32_p0, %s30_s23), 0  ;;  %p147_p5 = scmp.eq.s32.totalorder %s2376_s22, 1 }
   0xa   : > { %p3057_p4 = por %p141_p2, %p140_p1  ;;  %s126_s26 = ssub.s32 %s2982_s19, %s3762_s23 }
   0xb   : > { %p2377_p6 = scmp.ge.s32.totalorder %s2986_s20, 1  ;;  %p128_p7 = scmp.eq.s32.totalorder %s126_s26, 0 }
   0xc   : > { %s3743_s25 = scalar_select %p3057_p4, 1, 0 }
   0xd   : > { %p3064_p8 = por %p147_p5, %p146_p3  ;;  %p154_p9 = scmp.lt.s32.totalorder %s2986_s20, 3 }
   0xe   : > { %s3070_s28 = scalar_select %p128_p7, %s2974_s17, %s130_s24  }
   0xf   : > { %s3744_s27 = scalar_select %p3064_p8, 1, 0 }
  0x10   : > { %p3072_p10 = pnand %p2377_p6, %p154_p9  ;;  %p3076_p11 = scmp.eq.s32.totalorder %s2375_s21, 0 }
  0x11   : > { %s2988_s5 = smov [#allocation2]   ;;  %s2876_s10 = scalar_lea.hbm %s3734_s2, 8192 }
  0x12   : > { %s3745_s29 = scalar_select %p3072_p10, 1, 0 }
  0x13   : > { %s3746_s30 = scalar_select %p3076_p11, 1, 0 }
  0x14   : > { %p2558_p12 = pneg %p3072_p10  ;;  %s169_s6 = sshll.u32 %s2988_s5, 4  ;;  %s170_s6 = int_to_ptr.vmem [resolvable:$true] %s169_s6 }
  0x15   : > { %p2877_p0 = scmp.ne.s32.totalorder %s3734_s2, %s2876_s10  ;;  %p2883_p5 = scmp.lt.u32.totalorder %s2876_s10, %s3734_s2 }
  0x16   : > { %p3084_p13 = pnand %p3076_p11, %p2558_p12 }
  0x18   : > { %p2878_p1 = pneg %p3084_p13 }
  0x1a   : > { %p2879_p2 = pnand %p2878_p1, %p2877_p0 }
  0x1c   : > { %p2880_p3 = pneg %p2879_p2 }
  0x1e   : > { %p2885_p6 = pnand %p2883_p5, %p2880_p3 }
  0x20   : > { %2888 = shalt.err (!%p2885_p6)
}
  0x21   : > { %s2889_s21 = scalar_lea.vmem %s170_s6, 8192  ;;  %p2897_p8 = scmp.lt.s32.totalorder %s170_s6, %s170_s6 }
  0x22   : > { %p2890_p7 = scmp.ne.s32.totalorder %s170_s6, %s2889_s21  ;;  %p2898_p4 = scmp.lt.s32.totalorder %s2889_s21, %s2889_s21 }
  0x24   : > { %p2892_p9 = pnand %p2890_p7, %p2878_p1  ;;  %p2899_p11 = por %p2898_p4, %p2897_p8 }
  0x26   : > { %p2893_p12 = pneg %p2892_p9 }
  0x28   : > { %p2900_p10 = pnand %p2899_p11, %p2893_p12 }
  0x2a   : > { %2903 = shalt.err (!%p2900_p10)
}
  0x2b   : > { %s2989_s22 = smov 128   ;;  %s2990_s24 = smov 8  }
  0x2c   : > { %2561 = dma.hbm_to_vmem [thread:$0]  (!%p3084_p13), %s3734_s2, 8192, %s170_s6, [#allocation3], %s2989_s22, %s2989_s22, %s2990_s24  }
  0x2d   : > { %p3748_p0 = scmp.ne.s32.totalorder %s3745_s29, 0 }
  0x2f   : > { %202 = sbr.rel (%p3748_p0) target bundleno = 542 (0x21e), region = 36 }
  0x36   : > { %p3749_p2 = scmp.ne.s32.totalorder %s3746_s30, 0 }
  0x38   : > { %2957 = dma.done.wait (%p3749_p2), [#allocation3], 8192  }
  0x39   : > { %2959 = vsyncadd (%p3749_p2), [#allocation3], 4294959104  ;;  %v2620_v0 = vld [vmem:[#allocation2 + $0x4] ss:$8 sps:$4 sm:$0xff]   ;;  %v2624_v2 = vld [vmem:[#allocation2] ss:$8 sps:$4 sm:$0xff]  }
  0x3a   : > { %v2622_v1 = vld [vmem:[#allocation2 + $0x104] ss:$8 sps:$4 sm:$0xff]   ;;  %1665 = vmatprep.subr.bf16.mxu0 %v2620_v0  ;;  %v2625_v3 = vld [vmem:[#allocation2 + $0x100] ss:$8 sps:$4 sm:$0xff]   ;;  %v2626_v4 = vld [vmem:[#allocation2 + $0x14] ss:$8 sps:$4 sm:$0xff]  }
  0x3b   : > { %1706 = vmatprep.subr.bf16.mxu1 %v2622_v1  ;;  %1666 = vmatpush1.bf16.msra.mxu0 %v2624_v2  ;;  %v2628_v5 = vld [vmem:[#allocation2 + $0x114] ss:$8 sps:$4 sm:$0xff]   ;;  %v2630_v6 = vld [vmem:[#allocation2 + $0x10] ss:$8 sps:$4 sm:$0xff]   ;;  %v2632_v8 = vld [vmem:[#allocation2 + $0x24] ss:$8 sps:$4 sm:$0xff]  }
  0x3c   : > { %1707 = vmatpush1.bf16.msra.mxu1 %v2625_v3  ;;  %1667 = vmatprep.subr.bf16.mxu0 %v2626_v4  ;;  %v2631_v7 = vld [vmem:[#allocation2 + $0x110] ss:$8 sps:$4 sm:$0xff]   ;;  %v2634_v9 = vld [vmem:[#allocation2 + $0x124] ss:$8 sps:$4 sm:$0xff]   ;;  %v2636_v10 = vld [vmem:[#allocation2 + $0x20] ss:$8 sps:$4 sm:$0xff]  }
  0x3d   : > { %1708 = vmatprep.subr.bf16.mxu1 %v2628_v5  ;;  %v2637_v11 = vld [vmem:[#allocation2 + $0x120] ss:$8 sps:$4 sm:$0xff]   ;;  %v2638_v12 = vld [vmem:[#allocation2 + $0x34] ss:$8 sps:$4 sm:$0xff]   ;;  %v2642_v14 = vld [vmem:[#allocation2 + $0x30] ss:$8 sps:$4 sm:$0xff]  }
  0x3e   : > { %v2640_v13 = vld [vmem:[#allocation2 + $0x134] ss:$8 sps:$4 sm:$0xff]   ;;  %v2643_v15 = vld [vmem:[#allocation2 + $0x130] ss:$8 sps:$4 sm:$0xff]   ;;  %v2644_v16 = vld [vmem:[#allocation2 + $0x44] ss:$8 sps:$4 sm:$0xff]  }
  0x3f   : > { %1668 = vmatpush1.bf16.msra.mxu0 %v2630_v6  ;;  %v2646_v17 = vld [vmem:[#allocation2 + $0x144] ss:$8 sps:$4 sm:$0xff]   ;;  %v2648_v18 = vld [vmem:[#allocation2 + $0x40] ss:$8 sps:$4 sm:$0xff]   ;;  %v2650_v20 = vld [vmem:[#allocation2 + $0x54] ss:$8 sps:$4 sm:$0xff]  }
  0x40   : > { %1709 = vmatpush1.bf16.msra.mxu1 %v2631_v7  ;;  %1669 = vmatprep.subr.bf16.mxu0 %v2632_v8  ;;  %v2649_v19 = vld [vmem:[#allocation2 + $0x140] ss:$8 sps:$4 sm:$0xff]   ;;  %v2652_v21 = vld [vmem:[#allocation2 + $0x154] ss:$8 sps:$4 sm:$0xff]   ;;  %v2654_v22 = vld [vmem:[#allocation2 + $0x50] ss:$8 sps:$4 sm:$0xff]  }
  0x41   : > { %1710 = vmatprep.subr.bf16.mxu1 %v2634_v9  ;;  %v2655_v23 = vld [vmem:[#allocation2 + $0x150] ss:$8 sps:$4 sm:$0xff]   ;;  %v2656_v24 = vld [vmem:[#allocation2 + $0x64] ss:$8 sps:$4 sm:$0xff]   ;;  %v2660_v26 = vld [vmem:[#allocation2 + $0x60] ss:$8 sps:$4 sm:$0xff]  }
  0x42   : > { %v2658_v25 = vld [vmem:[#allocation2 + $0x164] ss:$8 sps:$4 sm:$0xff]   ;;  %v2661_v27 = vld [vmem:[#allocation2 + $0x160] ss:$8 sps:$4 sm:$0xff]   ;;  %v2662_v28 = vld [vmem:[#allocation2 + $0x74] ss:$8 sps:$4 sm:$0xff]  }
  0x43   : > { %1670 = vmatpush1.bf16.msra.mxu0 %v2636_v10  ;;  %v2664_v29 = vld [vmem:[#allocation2 + $0x174] ss:$8 sps:$4 sm:$0xff]   ;;  %v2666_v30 = vld [vmem:[#allocation2 + $0x70] ss:$8 sps:$4 sm:$0xff]   ;;  %v2668_v32 = vld [vmem:[#allocation2 + $0x84] ss:$8 sps:$4 sm:$0xff]  }
  0x44   : > { %1711 = vmatpush1.bf16.msra.mxu1 %v2637_v11  ;;  %1671 = vmatprep.subr.bf16.mxu0 %v2638_v12  ;;  %v2667_v31 = vld [vmem:[#allocation2 + $0x170] ss:$8 sps:$4 sm:$0xff]   ;;  %p234_p4 = scmp.lt.s32.totalorder %s2978_s18, 1  ;;  %v2670_v33 = vld [vmem:[#allocation2 + $0x184] ss:$8 sps:$4 sm:$0xff]   ;;  %vm1302_vm0 = vcmask 1041409  }
  0x45   : > { %1712 = vmatprep.subr.bf16.mxu1 %v2640_v13  ;;  %v2672_v34 = vld [vmem:[#allocation2 + $0x80] ss:$8 sps:$4 sm:$0xff]   ;;  %v2674_v36 = vld [vmem:[#allocation2 + $0x94] ss:$8 sps:$4 sm:$0xff]   ;;  %v2678_v38 = vld [vmem:[#allocation2 + $0x90] ss:$8 sps:$4 sm:$0xff]  }
  0x46   : > { %v2673_v35 = vld [vmem:[#allocation2 + $0x180] ss:$8 sps:$4 sm:$0xff]   ;;  %s235_s29 = scalar_select %p234_p4, %s2978_s18, 1  ;;  %v2676_v37 = vld [vmem:[#allocation2 + $0x194] ss:$8 sps:$4 sm:$0xff]   ;;  %vm1304_vm1 = vcmask 1042434  }
  0x47   : > { %1672 = vmatpush1.bf16.msra.mxu0 %v2642_v14  ;;  %v2679_v39 = vld [vmem:[#allocation2 + $0x190] ss:$8 sps:$4 sm:$0xff]   ;;  %v2680_v40 = vld [vmem:[#allocation2 + $0xa4] ss:$8 sps:$4 sm:$0xff]   ;;  %v2684_v42 = vld [vmem:[#allocation2 + $0xa0] ss:$8 sps:$4 sm:$0xff]  }
  0x48   : > { %1713 = vmatpush1.bf16.msra.mxu1 %v2643_v15  ;;  %1673 = vmatprep.subr.bf16.mxu0 %v2644_v16  ;;  %s2550_s30 = sshll.u32 %s235_s29, 8  ;;  %v2682_v41 = vld [vmem:[#allocation2 + $0x1a4] ss:$8 sps:$4 sm:$0xff]   ;;  %v2685_v43 = vld [vmem:[#allocation2 + $0x1a0] ss:$8 sps:$4 sm:$0xff]   ;;  %vm1306_vm2 = vcmask 1043459  }
  0x49   : > { %1714 = vmatprep.subr.bf16.mxu1 %v2646_v17  ;;  %s3115_s8 = scalar_lea.vmem %s3732_s0, %s2550_s30  ;;  %v2686_v44 = vld [vmem:[#allocation2 + $0xb4] ss:$8 sps:$4 sm:$0xff]   ;;  %v2690_v46 = vld [vmem:[#allocation2 + $0xb0] ss:$8 sps:$4 sm:$0xff]   ;;  %v2692_v49 = vld [vmem:[#allocation2 + $0xc4] ss:$8 sps:$4 sm:$0xff]  }
  0x4a   : > { %v2688_v45 = vld [vmem:[#allocation2 + $0x1b4] ss:$8 sps:$4 sm:$0xff]   ;;  %v2691_v47 = vld [vmem:[#allocation2 + $0x1b0] ss:$8 sps:$4 sm:$0xff]   ;;  %v245_v48 = vld [vmem:[%s3115_s8] sm:$0xff]  ;;  %vm1308_vm3 = vcmask 1044484  }
  0x4b   : > { %1674 = vmatpush1.bf16.msra.mxu0 %v2648_v18  ;;  %v2694_v50 = vld [vmem:[#allocation2 + $0x1c4] ss:$8 sps:$4 sm:$0xff]   ;;  %v247_v51 = vld [vmem:[%s3115_s8 + $0x10] sm:$0xff]  ;;  %v2696_v16 = vld [vmem:[#allocation2 + $0xc0] ss:$8 sps:$4 sm:$0xff]   ;;  %vm1310_vm4 = vcmask 1045509  }
  0x4c   : > { %1715 = vmatpush1.bf16.msra.mxu1 %v2649_v19  ;;  %1675 = vmatprep.subr.bf16.mxu0 %v2650_v20  ;;  %v249_v52 = vld [vmem:[%s3115_s8 + $0x20] sm:$0xff]  ;;  %v251_v53 = vld [vmem:[%s3115_s8 + $0x30] sm:$0xff]  ;;  %v2386_v57 = vcombine.high %v245_v48, %v247_v51  ;;  %v3126_v59 = vcombine.low %v245_v48, %v247_v51  ;;  %vm1312_vm5 = vcmask 1046534   ;;  %vm1314_vm6 = vcmask 1047559   ;;  %s230_s14 = sand.u32 1, %s2970_s16   ;;  %p3754_p10 = scmp.ne.s32.totalorder %s3743_s25, 0 }
  0x4d   : > { %1716 = vmatprep.subr.bf16.mxu1 %v2652_v21  ;;  %v253_v54 = vld [vmem:[%s3115_s8 + $0x40] sm:$0xff]  ;;  %v255_v55 = vld [vmem:[%s3115_s8 + $0x50] sm:$0xff]  ;;  %v2390_v58 = vcombine.high %v249_v52, %v251_v53  ;;  %v3137_v0 = vcombine.low %v249_v52, %v251_v53  ;;  %s2382_s24 = sshll.u32 %s230_s14, 4  ;;  %s2268_s7 = scalar_lea.sflag [#allocation4], %s230_s14 }
  0x4e   : > { %v3124_v56 = vld [vmem:[%s3115_s8 + $0x60] sm:$0xff]  ;;  %v3129_v60 = vld [vmem:[%s3115_s8 + $0x70] sm:$0xff]  ;;  %v2394_v63 = vcombine.high %v253_v54, %v255_v55  ;;  %v3139_v1 = vcombine.low %v253_v54, %v255_v55  ;;  %v768_v7 = vunpack.i.l.bf16 %v2386_v57  ;;  %v769_v8 = vunpack.i.h.bf16 %v2386_v57  ;;  %s232_s26 = scalar_lea.vmem [#allocation5], %s2382_s24 }
  0x4f   : > { %1676 = vmatpush1.bf16.msra.mxu0 %v2654_v22  ;;  %v3132_v61 = vld [vmem:[%s3115_s8 + $0x80] sm:$0xff]  ;;  %v3135_v62 = vld [vmem:[%s3115_s8 + $0x90] sm:$0xff]  ;;  %v2398_v5 = vcombine.high %v3124_v56, %v3129_v60  ;;  %v808_v13 = vunpack.i.l.bf16 %v2390_v58  ;;  %v809_v14 = vunpack.i.h.bf16 %v2390_v58  ;;  %s2284_s5 = sshll.u32 %s232_s26, 4  ;;  %s3687_s5 = int_to_ptr.vmem [resolvable:$true] %s2284_s5 }
  0x50   : > { %1717 = vmatpush1.bf16.msra.mxu1 %v2655_v23  ;;  %1677 = vmatprep.subr.bf16.mxu0 %v2656_v24  ;;  %v3142_v2 = vld [vmem:[%s3115_s8 + $0xa0] sm:$0xff]  ;;  %v3145_v3 = vld [vmem:[%s3115_s8 + $0xb0] sm:$0xff]  ;;  %v2402_v6 = vcombine.high %v3132_v61, %v3135_v62  ;;  %v848_v15 = vunpack.i.l.bf16 %v2394_v63  ;;  %v770_v20 = vmax.f32 %v768_v7, %v769_v8  ;;  %v849_v21 = vunpack.i.h.bf16 %v2394_v63  ;;  %s2904_s9 = scalar_lea.vmem %s3687_s5, 256 }
  0x51   : > { %1718 = vmatprep.subr.bf16.mxu1 %v2658_v25  ;;  %v3148_v4 = vld [vmem:[%s3115_s8 + $0xc0] sm:$0xff]  ;;  %v3155_v9 = vld [vmem:[%s3115_s8 + $0xd0] sm:$0xff]  ;;  %v2406_v12 = vcombine.high %v3142_v2, %v3145_v3  ;;  %v810_v24 = vmax.f32 %v808_v13, %v809_v14  ;;  %v888_v25 = vunpack.i.l.bf16 %v2398_v5  ;;  %p2905_p8 = scmp.ne.s32.totalorder %s3687_s5, %s2904_s9 }
  0x52   : > { %v3158_v10 = vld [vmem:[%s3115_s8 + $0xe0] sm:$0xff]  ;;  %v3161_v11 = vld [vmem:[%s3115_s8 + $0xf0] sm:$0xff]  ;;  %v2410_v18 = vcombine.high %v3148_v4, %v3155_v9 }
  0x53   : > { %1678 = vmatpush1.bf16.msra.mxu0 %v2660_v26  ;;  %v2697_v17 = vld [vmem:[#allocation2 + $0x1c0] ss:$8 sps:$4 sm:$0xff]   ;;  %v2414_v19 = vcombine.high %v3158_v10, %v3161_v11  ;;  %v2698_v22 = vld [vmem:[#allocation2 + $0xd4] ss:$8 sps:$4 sm:$0xff]   ;;  %v889_v26 = vunpack.i.h.bf16 %v2398_v5  ;;  %p2906_p11 = pnand %p2905_p8, %p3754_p10 }
  0x54   : > { %1719 = vmatpush1.bf16.msra.mxu1 %v2661_v27  ;;  %1679 = vmatprep.subr.bf16.mxu0 %v2662_v28  ;;  %v2700_v23 = vld [vmem:[#allocation2 + $0x1d4] ss:$8 sps:$4 sm:$0xff]   ;;  %v928_v27 = vunpack.i.l.bf16 %v2402_v6  ;;  %v771_v28 = vrot.slane %v770_v20, 4  ;;  %v2708_v52 = vld [vmem:[#allocation2 + $0xe0] ss:$8 sps:$4 sm:$0xff]  }
  0x55   : > { %1720 = vmatprep.subr.bf16.mxu1 %v2664_v29  ;;  %v850_v29 = vmax.f32 %v848_v15, %v849_v21  ;;  %v1049_v57 = vunpack.i.h.bf16 %v2414_v19  ;;  %v2709_v58 = vld [vmem:[#allocation2 + $0x1e0] ss:$8 sps:$4 sm:$0xff]   ;;  %v2710_v8 = vld [vmem:[#allocation2 + $0xf4] ss:$8 sps:$4 sm:$0xff]   ;;  %v2714_v21 = vld [vmem:[#allocation2 + $0xf0] ss:$8 sps:$4 sm:$0xff]   ;;  %p2907_p13 = pneg %p2906_p11 }
  0x57   : > { %1680 = vmatpush1.bf16.msra.mxu0 %v2666_v30  ;;  %v929_v30 = vunpack.i.h.bf16 %v2402_v6 }
  0x58   : > { %1721 = vmatpush1.bf16.msra.mxu1 %v2667_v31  ;;  %1681 = vmatprep.subr.bf16.mxu0 %v2668_v32  ;;  %v968_v31 = vunpack.i.l.bf16 %v2406_v12  ;;  %v2702_v32 = vld [vmem:[#allocation2 + $0xd0] ss:$8 sps:$4 sm:$0xff]  }
  0x59   : > { %1722 = vmatprep.subr.bf16.mxu1 %v2670_v33  ;;  %v811_v33 = vrot.slane %v810_v24, 4 }
  0x5b   : > { %1682 = vmatpush1.bf16.msra.mxu0 %v2672_v34  ;;  %v890_v34 = vmax.f32 %v888_v25, %v889_v26  ;;  %v2715_v26 = vld [vmem:[#allocation2 + $0x1f0] ss:$8 sps:$4 sm:$0xff]  }
  0x5c   : > { %1723 = vmatpush1.bf16.msra.mxu1 %v2673_v35  ;;  %1683 = vmatprep.subr.bf16.mxu0 %v2674_v36  ;;  %v969_v35 = vunpack.i.h.bf16 %v2406_v12  ;;  %v1008_v36 = vunpack.i.l.bf16 %v2410_v18  ;;  %v2712_v12 = vld [vmem:[#allocation2 + $0x1f4] ss:$8 sps:$4 sm:$0xff]  }
  0x5d   : > { %1724 = vmatprep.subr.bf16.mxu1 %v2676_v37  ;;  %v2703_v37 = vld [vmem:[#allocation2 + $0x1d0] ss:$8 sps:$4 sm:$0xff]  }
  0x5f   : > { %1684 = vmatpush1.bf16.msra.mxu0 %v2678_v38  ;;  %v2704_v38 = vld [vmem:[#allocation2 + $0xe4] ss:$8 sps:$4 sm:$0xff]  }
  0x60   : > { %1725 = vmatpush1.bf16.msra.mxu1 %v2679_v39  ;;  %1685 = vmatprep.subr.bf16.mxu0 %v2680_v40  ;;  %v772_v39 = vmax.f32 %v770_v20, %v771_v28  ;;  %v851_v40 = vrot.slane %v850_v29, 4 }
  0x61   : > { %1726 = vmatprep.subr.bf16.mxu1 %v2682_v41  ;;  %v930_v41 = vmax.f32 %v928_v27, %v929_v30 }
  0x62   : > { %v773_v48 = vrot.slane %v772_v39, 2 }
  0x63   : > { %1686 = vmatpush1.bf16.msra.mxu0 %v2684_v42  ;;  %v1009_v42 = vunpack.i.h.bf16 %v2410_v18 }
  0x64   : > { %1727 = vmatpush1.bf16.msra.mxu1 %v2685_v43  ;;  %1687 = vmatprep.subr.bf16.mxu0 %v2686_v44  ;;  %v2706_v43 = vld [vmem:[#allocation2 + $0x1e4] ss:$8 sps:$4 sm:$0xff]   ;;  %v812_v44 = vmax.f32 %v810_v24, %v811_v33  ;;  %v774_v63 = vmax.f32 %v772_v39, %v773_v48  ;;  %v3185_v48 = vld [vmem:[%s3115_s8 + $0x38] sm:$0xff] }
  0x65   : > { %1728 = vmatprep.subr.bf16.mxu1 %v2688_v45  ;;  %v891_v45 = vrot.slane %v890_v34, 4  ;;  %v1010_v51 = vmax.f32 %v1008_v36, %v1009_v42  ;;  %v2753_v36 = vld [vmem:[%s3733_s1 + $0x104] ss:$8 sps:$4 sm:$0xff]  }
  0x66   : > { %v813_v53 = vrot.slane %v812_v44, 2 }
  0x67   : > { %1688 = vmatpush1.bf16.msra.mxu0 %v2690_v46  ;;  %v970_v46 = vmax.f32 %v968_v31, %v969_v35  ;;  %v892_v54 = vmax.f32 %v890_v34, %v891_v45  ;;  %v1011_v7 = vrot.slane %v1010_v51, 4  ;;  %v2750_v31 = vld [vmem:[%s3733_s1 + $0x4] ss:$8 sps:$4 sm:$0xff]  }
  0x68   : > { %1729 = vmatpush1.bf16.msra.mxu1 %v2691_v47  ;;  %1689 = vmatprep.subr.bf16.mxu0 %v2692_v49  ;;  %v1048_v47 = vunpack.i.l.bf16 %v2414_v19  ;;  %v852_v49 = vmax.f32 %v850_v29, %v851_v40  ;;  %v814_v13 = vmax.f32 %v812_v44, %v813_v53  ;;  %v3188_v53 = vld [vmem:[%s3115_s8 + $0x48] sm:$0xff] }
  0x69   : > { %1730 = vmatprep.subr.bf16.mxu1 %v2694_v50  ;;  %v931_v50 = vrot.slane %v930_v41, 4  ;;  %v971_v55 = vrot.slane %v970_v46, 4  ;;  %v893_v14 = vrot.slane %v892_v54, 2  ;;  %v1012_v20 = vmax.f32 %v1010_v51, %v1011_v7  ;;  %v3200_v7 = vld [vmem:[%s3115_s8 + $0x88] sm:$0xff] }
  0x6a   : > { %v853_v5 = vrot.slane %v852_v49, 2 }
  0x6b   : > { %1690 = vmatpush1.bf16.msra.mxu0 %v2696_v16  ;;  %v932_v6 = vmax.f32 %v930_v41, %v931_v50  ;;  %v972_v15 = vmax.f32 %v970_v46, %v971_v55  ;;  %v1050_v16 = vmax.f32 %v1048_v47, %v1049_v57  ;;  %v1013_v30 = vrot.slane %v1012_v20, 2  ;;  %v3176_v41 = vld [vmem:[%s3115_s8 + $0x8] sm:$0xff]  ;;  %v3179_v46 = vld [vmem:[%s3115_s8 + $0x18] sm:$0xff] }
  0x6c   : > { %1731 = vmatpush1.bf16.msra.mxu1 %v2697_v17  ;;  %1691 = vmatprep.subr.bf16.mxu0 %v2698_v22  ;;  %v775_v17 = vrot.slane %v774_v63, 1  ;;  %v854_v18 = vmax.f32 %v852_v49, %v853_v5  ;;  %v815_v22 = vrot.slane %v814_v13, 1  ;;  %v3182_v47 = vld [vmem:[%s3115_s8 + $0x28] sm:$0xff] }
  0x6d   : > { %1732 = vmatprep.subr.bf16.mxu1 %v2700_v23  ;;  %v933_v19 = vrot.slane %v932_v6, 2  ;;  %v894_v23 = vmax.f32 %v892_v54, %v893_v14  ;;  %v973_v24 = vrot.slane %v972_v15, 2  ;;  %v1051_v25 = vrot.slane %v1050_v16, 4  ;;  %v3191_v54 = vld [vmem:[%s3115_s8 + $0x58] sm:$0xff]  ;;  %v3194_v5 = vld [vmem:[%s3115_s8 + $0x68] sm:$0xff] }
  0x6e   : > { %v776_v27 = vmax.f32 %v774_v63, %v775_v17  ;;  %v855_v28 = vrot.slane %v854_v18, 1  ;;  %v1014_v40 = vmax.f32 %v1012_v20, %v1013_v30  ;;  %v2388_v17 = vcombine.high %v3176_v41, %v3179_v46 }
  0x6f   : > { %1692 = vmatpush1.bf16.msra.mxu0 %v2702_v32  ;;  %v934_v29 = vmax.f32 %v932_v6, %v933_v19  ;;  %v816_v32 = vmax.f32 %v814_v13, %v815_v22  ;;  %v895_v33 = vrot.slane %v894_v23, 1  ;;  %v974_v34 = vmax.f32 %v972_v15, %v973_v24  ;;  %v3197_v6 = vld [vmem:[%s3115_s8 + $0x78] sm:$0xff]  ;;  %v3206_v15 = vld [vmem:[%s3115_s8 + $0xa8] sm:$0xff] }
  0x70   : > { %1733 = vmatpush1.bf16.msra.mxu1 %v2703_v37  ;;  %1693 = vmatprep.subr.bf16.mxu0 %v2704_v38  ;;  %v1052_v35 = vmax.f32 %v1050_v16, %v1051_v25  ;;  %v777_v37 = vpack.i.bf16 %v776_v27, %v776_v27  ;;  %v856_v38 = vmax.f32 %v854_v18, %v855_v28  ;;  %v1015_v51 = vrot.slane %v1014_v40, 1  ;;  %v3209_v16 = vld [vmem:[%s3115_s8 + $0xb8] sm:$0xff]  ;;  %v3215_v22 = vld [vmem:[%s3115_s8 + $0xc8] sm:$0xff] }
  0x71   : > { %1734 = vmatprep.subr.bf16.mxu1 %v2706_v43  ;;  %v935_v39 = vrot.slane %v934_v29, 1  ;;  %v817_v42 = vpack.i.bf16 %v816_v32, %v816_v32  ;;  %v896_v43 = vmax.f32 %v894_v23, %v895_v33  ;;  %v975_v44 = vrot.slane %v974_v34, 1  ;;  %v3218_v23 = vld [vmem:[%s3115_s8 + $0xd8] sm:$0xff]  ;;  %v3222_v27 = vld [vmem:[%s3115_s8 + $0xe8] sm:$0xff] }
  0x72   : > { %v1053_v45 = vrot.slane %v1052_v35, 2  ;;  %v857_v49 = vpack.i.bf16 %v856_v38, %v856_v38  ;;  %v1016_v13 = vmax.f32 %v1014_v40, %v1015_v51  ;;  %v2392_v28 = vcombine.high %v3182_v47, %v3185_v48  ;;  %v3228_v32 = vld [vmem:[%s3115_s8 + $0xf8] sm:$0xff] }
  0x73   : > { %1694 = vmatpush1.bf16.msra.mxu0 %v2708_v52  ;;  %v936_v50 = vmax.f32 %v934_v29, %v935_v39  ;;  %v1271_v52 = vunpack.c.l.b16 %v777_v37  ;;  %v897_v55 = vpack.i.bf16 %v896_v43, %v896_v43  ;;  %v976_v57 = vmax.f32 %v974_v34, %v975_v44 }
  0x74   : > { %1735 = vmatpush1.bf16.msra.mxu1 %v2709_v58  ;;  %1695 = vmatprep.subr.bf16.mxu0 %v2710_v8  ;;  %v1054_v58 = vmax.f32 %v1052_v35, %v1053_v45  ;;  %v1275_v63 = vunpack.c.l.b16 %v817_v42  ;;  %v3203_v8 = vld [vmem:[%s3115_s8 + $0x98] sm:$0xff]  ;;  %v1279_v14 = vunpack.c.l.b16 %v857_v49  ;;  %v1017_v24 = vpack.i.bf16 %v1016_v13, %v1016_v13 }
  0x75   : > { %1736 = vmatprep.subr.bf16.mxu1 %v2712_v12  ;;  %v937_v12 = vpack.i.bf16 %v936_v50, %v936_v50  ;;  %v977_v18 = vpack.i.bf16 %v976_v57, %v976_v57  ;;  %v1283_v20 = vunpack.c.l.b16 %v897_v55  ;;  %v2396_v33 = vcombine.high %v3188_v53, %v3191_v54 }
  0x76   : > { %v1055_v19 = vrot.slane %v1054_v58, 1  ;;  %v1295_v34 = vunpack.c.l.b16 %v1017_v24  ;;  %v2404_v37 = vcombine.high %v3200_v7, %v3203_v8  ;;  %v2408_v40 = vcombine.high %v3206_v15, %v3209_v16 }
  0x77   : > { %1696 = vmatpush1.bf16.msra.mxu0 %v2714_v21  ;;  %v1316_v21 = vsel %vm1302_vm0, %v1275_v63, %v1271_v52  ;;  %v1287_v25 = vunpack.c.l.b16 %v937_v12  ;;  %v1291_v30 = vunpack.c.l.b16 %v977_v18  ;;  %v2412_v42 = vcombine.high %v3215_v22, %v3218_v23 }
  0x78   : > { %1737 = vmatpush1.bf16.msra.mxu1 %v2715_v26  ;;  %2167 = vmatprep.subr.bf16.mxu0 %v2750_v31  ;;  %v1317_v26 = vsel %vm1304_vm1, %v1279_v14, %v1316_v21  ;;  %v1056_v29 = vmax.f32 %v1054_v58, %v1055_v19  ;;  %v2416_v44 = vcombine.high %v3222_v27, %v3228_v32  ;;  %v788_v45 = vunpack.i.l.bf16 %v2388_v17 }
  0x79   : > { %2208 = vmatprep.subr.bf16.mxu1 %v2753_v36  ;;  %v1318_v31 = vsel %vm1306_vm2, %v1283_v20, %v1317_v26  ;;  %v2400_v36 = vcombine.high %v3194_v5, %v3197_v6  ;;  %v789_v49 = vunpack.i.h.bf16 %v2388_v17  ;;  %v828_v51 = vunpack.i.l.bf16 %v2392_v28 }
  0x7a   : > { %v1319_v35 = vsel %vm1308_vm3, %v1287_v25, %v1318_v31  ;;  %v1057_v38 = vpack.i.bf16 %v1056_v29, %v1056_v29  ;;  %v829_v52 = vunpack.i.h.bf16 %v2392_v28  ;;  %v868_v55 = vunpack.i.l.bf16 %v2396_v33 }
  0x7b   : > { %v1320_v39 = vsel %vm1310_vm4, %v1291_v30, %v1319_v35  ;;  %v790_v57 = vmax.f32 %v788_v45, %v789_v49  ;;  %v869_v58 = vunpack.i.h.bf16 %v2396_v33  ;;  %v908_v63 = vunpack.i.l.bf16 %v2400_v36 }
  0x7c   : > { %v1321_v43 = vsel %vm1312_vm5, %v1295_v34, %v1320_v39  ;;  %v1299_v50 = vunpack.c.l.b16 %v1057_v38  ;;  %v909_v12 = vunpack.i.h.bf16 %v2400_v36  ;;  %v830_v14 = vmax.f32 %v828_v51, %v829_v52 }
  0x7d   : > { %v948_v18 = vunpack.i.l.bf16 %v2404_v37  ;;  %v949_v19 = vunpack.i.h.bf16 %v2404_v37  ;;  %v791_v21 = vrot.slane %v790_v57, 4  ;;  %v870_v24 = vmax.f32 %v868_v55, %v869_v58 }
  0x7e   : > { %v1322_v13 = vsel %vm1314_vm6, %v1299_v50, %v1321_v43  ;;  %v910_v25 = vmax.f32 %v908_v63, %v909_v12  ;;  %v831_v26 = vrot.slane %v830_v14, 4  ;;  %v988_v17 = vunpack.i.l.bf16 %v2408_v40 }
  0x7f   : > { %v1338_v20 = vpack.c.b16 %v1322_v13, %v1322_v13  ;;  %v950_v29 = vmax.f32 %v948_v18, %v949_v19  ;;  %v989_v30 = vunpack.i.h.bf16 %v2408_v40  ;;  %v792_v28 = vmax.f32 %v790_v57, %v791_v21 }
  0x80   : > { %v871_v31 = vrot.slane %v870_v24, 4  ;;  %v911_v34 = vrot.slane %v910_v25, 4  ;;  %v1028_v33 = vunpack.i.l.bf16 %v2412_v42  ;;  %v832_v35 = vmax.f32 %v830_v14, %v831_v26 }
  0x81   : > { %1697 = vmatprep.mubr.bf16.mxu0 %v1338_v20  ;;  %v951_v36 = vrot.slane %v950_v29, 4  ;;  %v990_v38 = vmax.f32 %v988_v17, %v989_v30  ;;  %v1029_v39 = vunpack.i.h.bf16 %v2412_v42  ;;  %v793_v43 = vrot.slane %v792_v28, 2 }
  0x82   : > { %v872_v45 = vmax.f32 %v870_v24, %v871_v31  ;;  %v912_v37 = vmax.f32 %v910_v25, %v911_v34  ;;  %v1068_v49 = vunpack.i.l.bf16 %v2416_v44  ;;  %v833_v50 = vrot.slane %v832_v35, 2 }
  0x83   : > { %v952_v51 = vmax.f32 %v950_v29, %v951_v36  ;;  %v991_v52 = vrot.slane %v990_v38, 4  ;;  %v1030_v55 = vmax.f32 %v1028_v33, %v1029_v39  ;;  %v794_v58 = vmax.f32 %v792_v28, %v793_v43 }
  0x84   : > { %v873_v63 = vrot.slane %v872_v45, 2  ;;  %v913_v40 = vrot.slane %v912_v37, 2  ;;  %v1069_v12 = vunpack.i.h.bf16 %v2416_v44  ;;  %v834_v57 = vmax.f32 %v832_v35, %v833_v50 }
  0x85   : > { %v953_v13 = vrot.slane %v952_v51, 2  ;;  %v992_v18 = vmax.f32 %v990_v38, %v991_v52  ;;  %v1031_v19 = vrot.slane %v1030_v55, 4  ;;  %v795_v14 = vrot.slane %v794_v58, 1 }
  0x86   : > { %v874_v20 = vmax.f32 %v872_v45, %v873_v63  ;;  %v914_v21 = vmax.f32 %v912_v37, %v913_v40  ;;  %v1070_v42 = vmax.f32 %v1068_v49, %v1069_v12  ;;  %v835_v26 = vrot.slane %v834_v57, 1 }
  0x87   : > { %v954_v24 = vmax.f32 %v952_v51, %v953_v13  ;;  %v993_v25 = vrot.slane %v992_v18, 2  ;;  %v1032_v17 = vmax.f32 %v1030_v55, %v1031_v19  ;;  %v796_v30 = vmax.f32 %v794_v58, %v795_v14 }
  0x88   : > { %v875_v29 = vrot.slane %v874_v20, 1  ;;  %v915_v31 = vrot.slane %v914_v21, 1  ;;  %v1071_v34 = vrot.slane %v1070_v42, 4  ;;  %v836_v28 = vmax.f32 %v834_v57, %v835_v26 }
  0x89   : > { %v955_v33 = vrot.slane %v954_v24, 1  ;;  %v994_v36 = vmax.f32 %v992_v18, %v993_v25  ;;  %v1033_v44 = vrot.slane %v1032_v17, 2  ;;  %v797_v35 = vpack.i.bf16 %v796_v30, %v796_v30 }
  0x8a   : > { %v876_v39 = vmax.f32 %v874_v20, %v875_v29  ;;  %v916_v38 = vmax.f32 %v914_v21, %v915_v31  ;;  %v1072_v43 = vmax.f32 %v1070_v42, %v1071_v34  ;;  %v837_v50 = vpack.i.bf16 %v836_v28, %v836_v28 }
  0x8b   : > { %v956_v45 = vmax.f32 %v954_v24, %v955_v33  ;;  %v995_v37 = vrot.slane %v994_v36, 1  ;;  %v1034_v49 = vmax.f32 %v1032_v17, %v1033_v44  ;;  %v1273_v55 = vunpack.c.l.b16 %v797_v35 }
  0x8c   : > { %v877_v52 = vpack.i.bf16 %v876_v39, %v876_v39  ;;  %v917_v51 = vpack.i.bf16 %v916_v38, %v916_v38  ;;  %v1073_v63 = vrot.slane %v1072_v43, 2  ;;  %v1277_v13 = vunpack.c.l.b16 %v837_v50 }
  0x8d   : > { %v957_v58 = vpack.i.bf16 %v956_v45, %v956_v45  ;;  %v996_v40 = vmax.f32 %v994_v36, %v995_v37  ;;  %v1035_v12 = vrot.slane %v1034_v49, 1  ;;  %v2397_v14 = vcombine.low %v3124_v56, %v3129_v60 }
  0x8e   : > { %v1074_v57 = vmax.f32 %v1072_v43, %v1073_v63  ;;  %v1281_v19 = vunpack.c.l.b16 %v877_v52  ;;  %v1285_v18 = vunpack.c.l.b16 %v917_v51  ;;  %v1330_v26 = vsel %vm1302_vm0, %v1277_v13, %v1273_v55 }
  0x8f   : > { %v997_v20 = vpack.i.bf16 %v996_v40, %v996_v40  ;;  %v1036_v21 = vmax.f32 %v1034_v49, %v1035_v12  ;;  %v1289_v42 = vunpack.c.l.b16 %v957_v58  ;;  %v2401_v17 = vcombine.low %v3132_v61, %v3135_v62 }
  0x90   : > { %v1075_v24 = vrot.slane %v1074_v57, 1  ;;  %v1331_v25 = vsel %vm1304_vm1, %v1281_v19, %v1330_v26  ;;  %v2405_v30 = vcombine.low %v3142_v2, %v3145_v3  ;;  %v2409_v56 = vcombine.low %v3148_v4, %v3155_v9 }
  0x91   : > { %v1037_v29 = vpack.i.bf16 %v1036_v21, %v1036_v21  ;;  %v1293_v31 = vunpack.c.l.b16 %v997_v20  ;;  %v1332_v34 = vsel %vm1306_vm2, %v1285_v18, %v1331_v25  ;;  %v2413_v33 = vcombine.low %v3158_v10, %v3161_v11 }
  0x92   : > { %v1076_v60 = vmax.f32 %v1074_v57, %v1075_v24  ;;  %v1333_v28 = vsel %vm1308_vm3, %v1289_v42, %v1332_v34  ;;  %v758_v36 = vunpack.i.l.bf16 %v3126_v59  ;;  %v759_v62 = vunpack.i.h.bf16 %v3126_v59 }
  0x93   : > { %v1297_v44 = vunpack.c.l.b16 %v1037_v29  ;;  %v1334_v61 = vsel %vm1310_vm4, %v1293_v31, %v1333_v28  ;;  %v798_v2 = vunpack.i.l.bf16 %v3137_v0  ;;  %v799_v35 = vunpack.i.h.bf16 %v3137_v0 }
  0x94   : > { %v1077_v3 = vpack.i.bf16 %v1076_v60, %v1076_v60  ;;  %v838_v4 = vunpack.i.l.bf16 %v3139_v1  ;;  %v839_v9 = vunpack.i.h.bf16 %v3139_v1  ;;  %v760_v38 = vmax.f32 %v758_v36, %v759_v62 }
  0x95   : > { %v1335_v39 = vsel %vm1312_vm5, %v1297_v44, %v1334_v61  ;;  %v878_v10 = vunpack.i.l.bf16 %v2397_v14  ;;  %v879_v11 = vunpack.i.h.bf16 %v2397_v14  ;;  %v800_v50 = vmax.f32 %v798_v2, %v799_v35 }
  0x96   : > { %v1301_v43 = vunpack.c.l.b16 %v1077_v3  ;;  %v840_v45 = vmax.f32 %v838_v4, %v839_v9  ;;  %v918_v37 = vunpack.i.l.bf16 %v2401_v17  ;;  %v761_v49 = vrot.slane %v760_v38, 4 }
  0x97   : > { %v880_v59 = vmax.f32 %v878_v10, %v879_v11  ;;  %v919_v52 = vunpack.i.h.bf16 %v2401_v17  ;;  %v958_v51 = vunpack.i.l.bf16 %v2405_v30  ;;  %v801_v0 = vrot.slane %v800_v50, 4 }
  0x98   : > { %v1336_v63 = vsel %vm1314_vm6, %v1301_v43, %v1335_v39  ;;  %v841_v55 = vrot.slane %v840_v45, 4  ;;  %v959_v58 = vunpack.i.h.bf16 %v2405_v30  ;;  %v762_v1 = vmax.f32 %v760_v38, %v761_v49 }
  0x99   : > { %v1340_v40 = vpack.c.b16 %v1336_v63, %v1336_v63  ;;  %v881_v12 = vrot.slane %v880_v59, 4  ;;  %v920_v13 = vmax.f32 %v918_v37, %v919_v52  ;;  %v802_v57 = vmax.f32 %v800_v50, %v801_v0 }
  0x9a   : > { %v842_v19 = vmax.f32 %v840_v45, %v841_v55  ;;  %v960_v18 = vmax.f32 %v958_v51, %v959_v58  ;;  %v998_v14 = vunpack.i.l.bf16 %v2409_v56  ;;  %v763_v20 = vrot.slane %v762_v1, 2 }
  0x9b   : > { %1738 = vmatprep.mubr.bf16.mxu1 %v1340_v40  ;;  %v882_v21 = vmax.f32 %v880_v59, %v881_v12  ;;  %v921_v42 = vrot.slane %v920_v13, 4  ;;  %v999_v26 = vunpack.i.h.bf16 %v2409_v56  ;;  %v803_v24 = vrot.slane %v802_v57, 2 }
  0x9c   : > { %v843_v25 = vrot.slane %v842_v19, 2  ;;  %v961_v17 = vrot.slane %v960_v18, 4  ;;  %v1038_v29 = vunpack.i.l.bf16 %v2413_v33  ;;  %v764_v31 = vmax.f32 %v762_v1, %v763_v20 }
  0x9d   : > { %v883_v34 = vrot.slane %v882_v21, 2  ;;  %v922_v30 = vmax.f32 %v920_v13, %v921_v42  ;;  %v1000_v60 = vmax.f32 %v998_v14, %v999_v26  ;;  %v804_v28 = vmax.f32 %v802_v57, %v803_v24 }
  0x9e   : > { %v844_v36 = vmax.f32 %v842_v19, %v843_v25  ;;  %v962_v44 = vmax.f32 %v960_v18, %v961_v17  ;;  %v1039_v61 = vunpack.i.h.bf16 %v2413_v33  ;;  %v765_v62 = vrot.slane %v764_v31, 1 }
  0x9f   : > { %v884_v2 = vmax.f32 %v882_v21, %v883_v34  ;;  %v923_v3 = vrot.slane %v922_v30, 2  ;;  %v1001_v35 = vrot.slane %v1000_v60, 4  ;;  %v805_v4 = vrot.slane %v804_v28, 1 }
  0xa0   : > { %v845_v9 = vrot.slane %v844_v36, 1  ;;  %v963_v39 = vrot.slane %v962_v44, 2  ;;  %v1040_v56 = vmax.f32 %v1038_v29, %v1039_v61  ;;  %v766_v38 = vmax.f32 %v764_v31, %v765_v62 }
  0xa1   : > { %v885_v10 = vrot.slane %v884_v2, 1  ;;  %v924_v11 = vmax.f32 %v922_v30, %v923_v3  ;;  %v1002_v43 = vmax.f32 %v1000_v60, %v1001_v35  ;;  %v806_v50 = vmax.f32 %v804_v28, %v805_v4 }
  0xa2   : > { %v846_v45 = vmax.f32 %v844_v36, %v845_v9  ;;  %v964_v37 = vmax.f32 %v962_v44, %v963_v39  ;;  %v1041_v49 = vrot.slane %v1040_v56, 4  ;;  %v767_v59 = vpack.i.bf16 %v766_v38, %v766_v38 }
  0xa3   : > { %v886_v52 = vmax.f32 %v884_v2, %v885_v10  ;;  %v925_v51 = vrot.slane %v924_v11, 1  ;;  %v1003_v33 = vrot.slane %v1002_v43, 2  ;;  %v807_v63 = vpack.i.bf16 %v806_v50, %v806_v50 }
  0xa4   : > { %v847_v0 = vpack.i.bf16 %v846_v45, %v846_v45  ;;  %v965_v55 = vrot.slane %v964_v37, 1  ;;  %v1042_v58 = vmax.f32 %v1040_v56, %v1041_v49  ;;  %v1270_v13 = vunpack.c.l.b16 %v767_v59  ;;  %v2748_v59 = vld [vmem:[%s3733_s1] ss:$8 sps:$4 sm:$0xff]  }
  0xa5   : > { %v887_v40 = vpack.i.bf16 %v886_v52, %v886_v52  ;;  %v926_v1 = vmax.f32 %v924_v11, %v925_v51  ;;  %v1004_v12 = vmax.f32 %v1002_v43, %v1003_v33  ;;  %v1274_v18 = vunpack.c.l.b16 %v807_v63 }
  0xa6   : > { %v966_v57 = vmax.f32 %v964_v37, %v965_v55  ;;  %v1043_v19 = vrot.slane %v1042_v58, 2  ;;  %v1278_v14 = vunpack.c.l.b16 %v847_v0  ;;  %v2387_v26 = vcombine.low %v3176_v41, %v3179_v46  ;;  %v2756_v0 = vld [vmem:[%s3733_s1 + $0x14] ss:$8 sps:$4 sm:$0xff]  }
  0xa7   : > { %v927_v20 = vpack.i.bf16 %v926_v1, %v926_v1  ;;  %v1005_v21 = vrot.slane %v1004_v12, 1  ;;  %v1282_v42 = vunpack.c.l.b16 %v887_v40  ;;  %v1303_v17 = vsel %vm1302_vm0, %v1274_v18, %v1270_v13 }
  0xa8   : > { %v967_v24 = vpack.i.bf16 %v966_v57, %v966_v57  ;;  %v1044_v25 = vmax.f32 %v1042_v58, %v1043_v19  ;;  %v2391_v29 = vcombine.low %v3182_v47, %v3185_v48  ;;  %v1305_v30 = vsel %vm1304_vm1, %v1278_v14, %v1303_v17 }
  0xa9   : > { %v1006_v31 = vmax.f32 %v1004_v12, %v1005_v21  ;;  %v1286_v34 = vunpack.c.l.b16 %v927_v20  ;;  %v2395_v60 = vcombine.low %v3188_v53, %v3191_v54  ;;  %v1307_v44 = vsel %vm1306_vm2, %v1282_v42, %v1305_v30  ;;  %v2754_v42 = vld [vmem:[%s3733_s1 + $0x10] ss:$8 sps:$4 sm:$0xff]  }
  0xaa   : > { %v1045_v28 = vrot.slane %v1044_v25, 1  ;;  %v1290_v36 = vunpack.c.l.b16 %v967_v24  ;;  %v2399_v41 = vcombine.low %v3194_v5, %v3197_v6  ;;  %v2403_v47 = vcombine.low %v3200_v7, %v3203_v8 }
  0xab   : > { %v1007_v46 = vpack.i.bf16 %v1006_v31, %v1006_v31  ;;  %v1309_v61 = vsel %vm1308_vm3, %v1286_v34, %v1307_v44  ;;  %v2407_v48 = vcombine.low %v3206_v15, %v3209_v16  ;;  %v2411_v53 = vcombine.low %v3215_v22, %v3218_v23 }
  0xac   : > { %v1046_v62 = vmax.f32 %v1044_v25, %v1045_v28  ;;  %v1311_v2 = vsel %vm1310_vm4, %v1290_v36, %v1309_v61  ;;  %v3290_v54 = vcombine.low %v3222_v27, %v3228_v32  ;;  %v778_v6 = vunpack.i.l.bf16 %v2387_v26 }
  0xad   : > { %v1294_v5 = vunpack.c.l.b16 %v1007_v46  ;;  %v779_v3 = vunpack.i.h.bf16 %v2387_v26  ;;  %v818_v35 = vunpack.i.l.bf16 %v2391_v29  ;;  %v819_v9 = vunpack.i.h.bf16 %v2391_v29  ;;  %v2762_v29 = vld [vmem:[%s3733_s1 + $0x24] ss:$8 sps:$4 sm:$0xff]  }
  0xae   : > { %v1047_v4 = vpack.i.bf16 %v1046_v62, %v1046_v62  ;;  %v858_v7 = vunpack.i.l.bf16 %v2395_v60  ;;  %v859_v8 = vunpack.i.h.bf16 %v2395_v60  ;;  %v898_v39 = vunpack.i.l.bf16 %v2399_v41  ;;  %v2760_v62 = vld [vmem:[%s3733_s1 + $0x20] ss:$8 sps:$4 sm:$0xff]  }
  0xaf   : > { %v1313_v15 = vsel %vm1312_vm5, %v1294_v5, %v1311_v2  ;;  %v780_v16 = vmax.f32 %v778_v6, %v779_v3  ;;  %v899_v56 = vunpack.i.h.bf16 %v2399_v41  ;;  %v820_v10 = vmax.f32 %v818_v35, %v819_v9 }
  0xb0   : > { %v1298_v38 = vunpack.c.l.b16 %v1047_v4  ;;  %v860_v22 = vmax.f32 %v858_v7, %v859_v8  ;;  %v938_v23 = vunpack.i.l.bf16 %v2403_v47  ;;  %v939_v32 = vunpack.i.h.bf16 %v2403_v47 }
  0xb1   : > { %v781_v11 = vrot.slane %v780_v16, 4  ;;  %v900_v27 = vmax.f32 %v898_v39, %v899_v56  ;;  %v978_v43 = vunpack.i.l.bf16 %v2407_v48  ;;  %v821_v45 = vrot.slane %v820_v10, 4 }
  0xb2   : > { %v1315_v50 = vsel %vm1314_vm6, %v1298_v38, %v1313_v15  ;;  %v861_v37 = vrot.slane %v860_v22, 4  ;;  %v979_v49 = vunpack.i.h.bf16 %v2407_v48  ;;  %v940_v63 = vmax.f32 %v938_v23, %v939_v32 }
  0xb3   : > { %v1337_v52 = vpack.c.b16 %v1315_v50, %v1315_v50  ;;  %v782_v51 = vmax.f32 %v780_v16, %v781_v11  ;;  %v901_v33 = vrot.slane %v900_v27, 4  ;;  %v822_v55 = vmax.f32 %v820_v10, %v821_v45 }
  0xb4   : > { %v862_v58 = vmax.f32 %v860_v22, %v861_v37  ;;  %v980_v40 = vmax.f32 %v978_v43, %v979_v49  ;;  %v1018_v1 = vunpack.i.l.bf16 %v2411_v53  ;;  %v941_v57 = vrot.slane %v940_v63, 4  ;;  %v2766_v22 = vld [vmem:[%s3733_s1 + $0x30] ss:$8 sps:$4 sm:$0xff]   ;;  %v2774_v43 = vld [vmem:[%s3733_s1 + $0x44] ss:$8 sps:$4 sm:$0xff]  }
  0xb5   : > { %1698 = vmatmul.mubr.bf16.vlgmr.msra.gmra.mrb[0].mxu0 %v1337_v52  ;;  %v783_v12 = vrot.slane %v782_v51, 2  ;;  %v902_v13 = vmax.f32 %v900_v27, %v901_v33  ;;  %v1019_v19 = vunpack.i.h.bf16 %v2411_v53  ;;  %v823_v18 = vrot.slane %v822_v55, 2  ;;  %v3321_v33 = vld [vmem:[%s3115_s8] sm:$0xff] }
  0xb6   : > { %v863_v14 = vrot.slane %v862_v58, 2  ;;  %v981_v20 = vrot.slane %v980_v40, 4  ;;  %v1058_v21 = vunpack.i.l.bf16 %v3290_v54  ;;  %2168 = vmatpush1.bf16.msra.mxu0 %v2748_v59  ;;  %v942_v25 = vmax.f32 %v940_v63, %v941_v57 }
  0xb7   : > { %v784_v26 = vmax.f32 %v782_v51, %v783_v12  ;;  %v903_v24 = vrot.slane %v902_v13, 2  ;;  %v1020_v17 = vmax.f32 %v1018_v1, %v1019_v19  ;;  %2169 = vmatprep.subr.bf16.mxu0 %v2756_v0  ;;  %v824_v31 = vmax.f32 %v822_v55, %v823_v18  ;;  %v3329_v1 = vld [vmem:[%s3115_s8 + $0x10] sm:$0xff] }
  0xb8   : > { %v864_v34 = vmax.f32 %v862_v58, %v863_v14  ;;  %v982_v30 = vmax.f32 %v980_v40, %v981_v20  ;;  %v1059_v60 = vunpack.i.h.bf16 %v3290_v54  ;;  %v943_v44 = vrot.slane %v942_v25, 2  ;;  %v2768_v54 = vld [vmem:[%s3733_s1 + $0x34] ss:$8 sps:$4 sm:$0xff]   ;;  %v2772_v40 = vld [vmem:[%s3733_s1 + $0x40] ss:$8 sps:$4 sm:$0xff]  }
  0xb9   : > { %v785_v28 = vrot.slane %v784_v26, 1  ;;  %v904_v36 = vmax.f32 %v902_v13, %v903_v24  ;;  %v1021_v41 = vrot.slane %v1020_v17, 4  ;;  %v825_v46 = vrot.slane %v824_v31, 1  ;;  %v2780_v18 = vld [vmem:[%s3733_s1 + $0x54] ss:$8 sps:$4 sm:$0xff]   ;;  %v3337_v14 = vld [vmem:[%s3115_s8 + $0x20] sm:$0xff] }
  0xba   : > { %v865_v61 = vrot.slane %v864_v34, 1  ;;  %v983_v47 = vrot.slane %v982_v30, 2  ;;  %v1060_v48 = vmax.f32 %v1058_v21, %v1059_v60  ;;  %2170 = vmatpush1.bf16.msra.mxu0 %v2754_v42  ;;  %v944_v5 = vmax.f32 %v942_v25, %v943_v44  ;;  %v3342_v24 = vld [vmem:[%s3115_s8 + $0x30] sm:$0xff] }
  0xbb   : > { %v786_v2 = vmax.f32 %v784_v26, %v785_v28  ;;  %v905_v53 = vrot.slane %v904_v36, 1  ;;  %v1022_v6 = vmax.f32 %v1020_v17, %v1021_v41  ;;  %2171 = vmatprep.subr.bf16.mxu0 %v2762_v29  ;;  %v826_v3 = vmax.f32 %v824_v31, %v825_v46  ;;  %v3347_v31 = vld [vmem:[%s3115_s8 + $0x40] sm:$0xff]  ;;  %v2778_v44 = vld [vmem:[%s3733_s1 + $0x50] ss:$8 sps:$4 sm:$0xff]  }
  0xbc   : > { %v866_v35 = vmax.f32 %v864_v34, %v865_v61  ;;  %v984_v4 = vmax.f32 %v982_v30, %v983_v47  ;;  %v1061_v9 = vrot.slane %v1060_v48, 4  ;;  %v945_v15 = vrot.slane %v944_v5, 1  ;;  %v3351_v30 = vld [vmem:[%s3115_s8 + $0x50] sm:$0xff]  ;;  %v3359_v41 = vld [vmem:[%s3115_s8 + $0x60] sm:$0xff] }
  0xbd   : > { %v787_v7 = vpack.i.bf16 %v786_v2, %v786_v2  ;;  %v906_v8 = vmax.f32 %v904_v36, %v905_v53  ;;  %v1023_v16 = vrot.slane %v1022_v6, 2  ;;  %v827_v39 = vpack.i.bf16 %v826_v3, %v826_v3  ;;  %v3363_v61 = vld [vmem:[%s3115_s8 + $0x70] sm:$0xff]  ;;  %v3370_v2 = vld [vmem:[%s3115_s8 + $0x80] sm:$0xff] }
  0xbe   : > { %v867_v56 = vpack.i.bf16 %v866_v35, %v866_v35  ;;  %v985_v38 = vrot.slane %v984_v4, 1  ;;  %v1062_v10 = vmax.f32 %v1060_v48, %v1061_v9  ;;  %2172 = vmatpush1.bf16.msra.mxu0 %v2760_v62  ;;  %v946_v11 = vmax.f32 %v944_v5, %v945_v15  ;;  %v2786_v62 = vld [vmem:[%s3733_s1 + $0x64] ss:$8 sps:$4 sm:$0xff]   ;;  %v3374_v5 = vld [vmem:[%s3115_s8 + $0x90] sm:$0xff] }
  0xbf   : > { %v907_v23 = vpack.i.bf16 %v906_v8, %v906_v8  ;;  %v1024_v27 = vmax.f32 %v1022_v6, %v1023_v16  ;;  %v1272_v32 = vunpack.c.l.b16 %v787_v7  ;;  %2173 = vmatprep.subr.bf16.mxu0 %v2768_v54  ;;  %v1276_v37 = vunpack.c.l.b16 %v827_v39  ;;  %v3378_v54 = vld [vmem:[%s3115_s8 + $0xa0] sm:$0xff]  ;;  %v3390_v15 = vld [vmem:[%s3115_s8 + $0xd0] sm:$0xff] }
  0xc0   : > { %v986_v50 = vmax.f32 %v984_v4, %v985_v38  ;;  %v1063_v45 = vrot.slane %v1062_v10, 2  ;;  %v1280_v49 = vunpack.c.l.b16 %v867_v56  ;;  %v947_v59 = vpack.i.bf16 %v946_v11, %v946_v11  ;;  %v3382_v4 = vld [vmem:[%s3115_s8 + $0xb0] sm:$0xff]  ;;  %v3386_v7 = vld [vmem:[%s3115_s8 + $0xc0] sm:$0xff] }
  0xc1   : > { %v1025_v52 = vrot.slane %v1024_v27, 1  ;;  %v1284_v51 = vunpack.c.l.b16 %v907_v23  ;;  %v278_v63 = vunpack.c.h.bf16 %v3321_v33  ;;  %v1323_v58 = vsel %vm1302_vm0, %v1276_v37, %v1272_v32  ;;  %v3395_v56 = vld [vmem:[%s3115_s8 + $0xe0] sm:$0xff] }
  0xc2   : > { %v987_v0 = vpack.i.bf16 %v986_v50, %v986_v50  ;;  %v1064_v55 = vmax.f32 %v1062_v10, %v1063_v45  ;;  %2174 = vmatpush1.bf16.msra.mxu0 %v2766_v22  ;;  %v282_v12 = vunpack.c.h.bf16 %v3329_v1  ;;  %v1288_v57 = vunpack.c.l.b16 %v947_v59  ;;  %v3399_v10 = vld [vmem:[%s3115_s8 + $0xf0] sm:$0xff] }
  0xc3   : > { %v1026_v13 = vmax.f32 %v1024_v27, %v1025_v52  ;;  %v1324_v19 = vsel %vm1304_vm1, %v1280_v49, %v1323_v58  ;;  %2175 = vmatprep.subr.bf16.mxu0 %v2774_v43  ;;  %v286_v20 = vunpack.c.h.bf16 %v3337_v14  ;;  %v290_v25 = vunpack.c.h.bf16 %v3342_v24  ;;  %v2784_v27 = vld [vmem:[%s3733_s1 + $0x60] ss:$8 sps:$4 sm:$0xff]   ;;  %v2792_v45 = vld [vmem:[%s3733_s1 + $0x74] ss:$8 sps:$4 sm:$0xff]  }
  0xc4   : > { %v1065_v21 = vrot.slane %v1064_v55, 1  ;;  %v1292_v42 = vunpack.c.l.b16 %v987_v0  ;;  %v1325_v26 = vsel %vm1306_vm2, %v1284_v51, %v1324_v19  ;;  %v294_v34 = vunpack.c.h.bf16 %v3347_v31 }
  0xc5   : > { %v1027_v17 = vpack.i.bf16 %v1026_v13, %v1026_v13  ;;  %v1326_v29 = vsel %vm1308_vm3, %v1288_v57, %v1325_v26  ;;  %v298_v60 = vunpack.c.h.bf16 %v3351_v30  ;;  %v302_v46 = vunpack.c.h.bf16 %v3359_v41 }
  0xc6   : > { %v1066_v28 = vmax.f32 %v1064_v55, %v1065_v21  ;;  %v1327_v36 = vsel %vm1310_vm4, %v1292_v42, %v1326_v29  ;;  %2176 = vmatpush1.bf16.msra.mxu0 %v2772_v40  ;;  %v306_v47 = vunpack.c.h.bf16 %v3363_v61  ;;  %v310_v53 = vunpack.c.h.bf16 %v3370_v2 }
  0xc7   : > { %v1296_v48 = vunpack.c.l.b16 %v1027_v17  ;;  %2177 = vmatprep.subr.bf16.mxu0 %v2780_v18  ;;  %v314_v6 = vunpack.c.h.bf16 %v3374_v5  ;;  %v318_v3 = vunpack.c.h.bf16 %v3378_v54  ;;  %v322_v9 = vunpack.c.h.bf16 %v3382_v4  ;;  %v2790_v18 = vld [vmem:[%s3733_s1 + $0x70] ss:$8 sps:$4 sm:$0xff]  }
  0xc8   : > { %v1067_v35 = vpack.i.bf16 %v1066_v28, %v1066_v28  ;;  %v326_v8 = vunpack.c.h.bf16 %v3386_v7  ;;  %v330_v16 = vunpack.c.h.bf16 %v3390_v15  ;;  %v334_v38 = vunpack.c.h.bf16 %v3395_v56  ;;  %v2757_v28 = vld [vmem:[%s3733_s1 + $0x110] ss:$8 sps:$4 sm:$0xff]  }
  0xc9   : > { %v1328_v39 = vsel %vm1312_vm5, %v1296_v48, %v1327_v36  ;;  %v338_v22 = vunpack.c.h.bf16 %v3399_v10  ;;  %v348_v23 = vadd.f32 %v282_v12, %v278_v63  ;;  %v376_v32 = vadd.f32 %v290_v25, %v286_v20  ;;  %v2751_v63 = vld [vmem:[%s3733_s1 + $0x100] ss:$8 sps:$4 sm:$0xff]   ;;  %v2759_v12 = vld [vmem:[%s3733_s1 + $0x114] ss:$8 sps:$4 sm:$0xff]   ;;  %v2798_v25 = vld [vmem:[%s3733_s1 + $0x84] ss:$8 sps:$4 sm:$0xff]  }
  0xca   : > { %v1300_v11 = vunpack.c.l.b16 %v1067_v35  ;;  %2178 = vmatpush1.bf16.msra.mxu0 %v2778_v44  ;;  %v404_v43 = vadd.f32 %v298_v60, %v294_v34  ;;  %v432_v50 = vadd.f32 %v306_v47, %v302_v46  ;;  %v460_v49 = vadd.f32 %v314_v6, %v310_v53  ;;  %v2765_v48 = vld [vmem:[%s3733_s1 + $0x124] ss:$8 sps:$4 sm:$0xff]   ;;  %v2796_v35 = vld [vmem:[%s3733_s1 + $0x80] ss:$8 sps:$4 sm:$0xff]  }
  0xcb   : > { %2179 = vmatprep.subr.bf16.mxu0 %v2786_v62  ;;  %v349_v37 = vrot.slane %v348_v23, 4  ;;  %v488_v59 = vadd.f32 %v322_v9, %v318_v3  ;;  %v516_v52 = vadd.f32 %v330_v16, %v326_v8  ;;  %v377_v0 = vrot.slane %v376_v32, 4 }
  0xcc   : > { %v1329_v51 = vsel %vm1314_vm6, %v1300_v11, %v1328_v39  ;;  %v405_v55 = vrot.slane %v404_v43, 4  ;;  %v433_v58 = vrot.slane %v432_v50, 4  ;;  %v461_v57 = vrot.slane %v460_v49, 4 }
  0xcd   : > { %v1339_v40 = vpack.c.b16 %v1329_v51, %v1329_v51  ;;  %v350_v13 = vadd.f32 %v349_v37, %v348_v23  ;;  %v489_v19 = vrot.slane %v488_v59, 4  ;;  %v378_v20 = vadd.f32 %v377_v0, %v376_v32  ;;  %v2763_v32 = vld [vmem:[%s3733_s1 + $0x120] ss:$8 sps:$4 sm:$0xff]   ;;  %v2802_v0 = vld [vmem:[%s3733_s1 + $0x90] ss:$8 sps:$4 sm:$0xff]  }
  0xce   : > { %2180 = vmatpush1.bf16.msra.mxu0 %v2784_v27  ;;  %v406_v21 = vadd.f32 %v405_v55, %v404_v43  ;;  %v434_v42 = vadd.f32 %v433_v58, %v432_v50  ;;  %v517_v26 = vrot.slane %v516_v52, 4  ;;  %v462_v29 = vadd.f32 %v461_v57, %v460_v49  ;;  %v2771_v49 = vld [vmem:[%s3733_s1 + $0x134] ss:$8 sps:$4 sm:$0xff]  }
  0xcf   : > { %1739 = vmatmul.mubr.bf16.vlgmr.msra.gmra.mrb[0].mxu1 %v1339_v40  ;;  %2181 = vmatprep.subr.bf16.mxu0 %v2792_v45  ;;  %v351_v17 = vrot.slane %v350_v13, 2  ;;  %v490_v34 = vadd.f32 %v489_v19, %v488_v59  ;;  %v544_v60 = vadd.f32 %v338_v22, %v334_v38  ;;  %v379_v36 = vrot.slane %v378_v20, 2  ;;  %v2804_v38 = vld [vmem:[%s3733_s1 + $0x94] ss:$8 sps:$4 sm:$0xff]  }
  0xd0   : > { %2209 = vmatpush1.bf16.msra.mxu1 %v2751_v63  ;;  %v407_v44 = vrot.slane %v406_v21, 2  ;;  %v435_v46 = vrot.slane %v434_v42, 2  ;;  %v518_v47 = vadd.f32 %v517_v26, %v516_v52  ;;  %v463_v53 = vrot.slane %v462_v29, 2 }
  0xd1   : > { %2210 = vmatprep.subr.bf16.mxu1 %v2759_v12  ;;  %v352_v62 = vadd.f32 %v351_v17, %v350_v13  ;;  %v491_v6 = vrot.slane %v490_v34, 2  ;;  %v545_v3 = vrot.slane %v544_v60, 4  ;;  %v380_v9 = vadd.f32 %v379_v36, %v378_v20  ;;  %v2810_v13 = vld [vmem:[%s3733_s1 + $0xa4] ss:$8 sps:$4 sm:$0xff]  }
  0xd2   : > { %2182 = vmatpush1.bf16.msra.mxu0 %v2790_v18  ;;  %v408_v8 = vadd.f32 %v407_v44, %v406_v21  ;;  %v436_v16 = vadd.f32 %v435_v46, %v434_v42  ;;  %v519_v39 = vrot.slane %v518_v47, 2  ;;  %v464_v23 = vadd.f32 %v463_v53, %v462_v29  ;;  %v2769_v21 = vld [vmem:[%s3733_s1 + $0x130] ss:$8 sps:$4 sm:$0xff]   ;;  %v2777_v29 = vld [vmem:[%s3733_s1 + $0x144] ss:$8 sps:$4 sm:$0xff]  }
  0xd3   : > { %2183 = vmatprep.subr.bf16.mxu0 %v2798_v25  ;;  %v353_v22 = vrot.slane %v352_v62, 1  ;;  %v492_v11 = vadd.f32 %v491_v6, %v490_v34  ;;  %v546_v27 = vadd.f32 %v545_v3, %v544_v60  ;;  %v381_v43 = vrot.slane %v380_v9, 1  ;;  %v2808_v44 = vld [vmem:[%s3733_s1 + $0xa0] ss:$8 sps:$4 sm:$0xff]   ;;  %v2816_v53 = vld [vmem:[%s3733_s1 + $0xb4] ss:$8 sps:$4 sm:$0xff]  }
  0xd4   : > { %2211 = vmatpush1.bf16.msra.mxu1 %v2757_v28  ;;  %v409_v50 = vrot.slane %v408_v8, 1  ;;  %v437_v45 = vrot.slane %v436_v16, 1  ;;  %v520_v37 = vadd.f32 %v519_v39, %v518_v47  ;;  %v465_v52 = vrot.slane %v464_v23, 1 }
  0xd5   : > { %2212 = vmatprep.subr.bf16.mxu1 %v2765_v48  ;;  %v354_v59 = vadd.f32 %v353_v22, %v352_v62  ;;  %v493_v51 = vrot.slane %v492_v11, 1  ;;  %v547_v63 = vrot.slane %v546_v27, 2  ;;  %v382_v55 = vadd.f32 %v381_v43, %v380_v9  ;;  %v3464_v43 = vld [vmem:[%s3115_s8 + $0x8] sm:$0xff] }
  0xd6   : > { %2184 = vmatpush1.bf16.msra.mxu0 %v2796_v35  ;;  %v410_v58 = vadd.f32 %v409_v50, %v408_v8  ;;  %v438_v40 = vadd.f32 %v437_v45, %v436_v16  ;;  %v521_v12 = vrot.slane %v520_v37, 1  ;;  %v466_v57 = vadd.f32 %v465_v52, %v464_v23  ;;  %v2775_v8 = vld [vmem:[%s3733_s1 + $0x140] ss:$8 sps:$4 sm:$0xff]   ;;  %v2783_v23 = vld [vmem:[%s3733_s1 + $0x154] ss:$8 sps:$4 sm:$0xff]  }
  0xd7   : > { %2185 = vmatprep.subr.bf16.mxu0 %v2804_v38  ;;  %v494_v19 = vadd.f32 %v493_v51, %v492_v11  ;;  %v548_v18 = vadd.f32 %v547_v63, %v546_v27  ;;  %v567_v20 = vmul.f32 0.0625, %v354_v59  ;;  %v571_v26 = vmul.f32 0.0625, %v382_v55  ;;  %v2814_v45 = vld [vmem:[%s3733_s1 + $0xb0] ss:$8 sps:$4 sm:$0xff]   ;;  %v3476_v51 = vld [vmem:[%s3115_s8 + $0x28] sm:$0xff] }
  0xd8   : > { %2213 = vmatpush1.bf16.msra.mxu1 %v2763_v32  ;;  %v522_v42 = vadd.f32 %v521_v12, %v520_v37  ;;  %v575_v25 = vmul.f32 0.0625, %v410_v58  ;;  %v579_v17 = vmul.f32 0.0625, %v438_v40  ;;  %v583_v60 = vmul.f32 0.0625, %v466_v57  ;;  %v3472_v59 = vld [vmem:[%s3115_s8 + $0x18] sm:$0xff] }
  0xd9   : > { %2214 = vmatprep.subr.bf16.mxu1 %v2771_v49  ;;  %v549_v34 = vrot.slane %v548_v18, 1  ;;  %v587_v28 = vmul.f32 0.0625, %v494_v19  ;;  %v1079_v36 = vpack.c.bf16 %v567_v20, %v567_v20  ;;  %v1083_v47 = vpack.c.bf16 %v571_v26, %v571_v26  ;;  %v3484_v40 = vld [vmem:[%s3115_s8 + $0x38] sm:$0xff] }
  0xda   : > { %2186 = vmatpush1.bf16.msra.mxu0 %v2802_v0  ;;  %v591_v46 = vmul.f32 0.0625, %v522_v42  ;;  %v1087_v48 = vpack.c.bf16 %v575_v25, %v575_v25  ;;  %v1091_v62 = vpack.c.bf16 %v579_v17, %v579_v17  ;;  %v1095_v3 = vpack.c.bf16 %v583_v60, %v583_v60  ;;  %v2822_v0 = vld [vmem:[%s3733_s1 + $0xc4] ss:$8 sps:$4 sm:$0xff]   ;;  %v2781_v19 = vld [vmem:[%s3733_s1 + $0x150] ss:$8 sps:$4 sm:$0xff]  }
  0xdb   : > { %2187 = vmatprep.subr.bf16.mxu0 %v2810_v13  ;;  %v550_v6 = vadd.f32 %v549_v34, %v548_v18  ;;  %v1099_v35 = vpack.c.bf16 %v587_v28, %v587_v28  ;;  %v1780_v9 = vunpack.c.l.b16 %v1079_v36  ;;  %v1784_v39 = vunpack.c.l.b16 %v1083_v47  ;;  %v3488_v13 = vld [vmem:[%s3115_s8 + $0x48] sm:$0xff]  ;;  %v3496_v20 = vld [vmem:[%s3115_s8 + $0x58] sm:$0xff] }
  0xdc   : > { %2215 = vmatpush1.bf16.msra.mxu1 %v2769_v21  ;;  %v1103_v16 = vpack.c.bf16 %v591_v46, %v591_v46  ;;  %v1788_v38 = vunpack.c.l.b16 %v1087_v48  ;;  %v1792_v22 = vunpack.c.l.b16 %v1091_v62  ;;  %v1796_v27 = vunpack.c.l.b16 %v1095_v3  ;;  %v3500_v42 = vld [vmem:[%s3115_s8 + $0x68] sm:$0xff]  ;;  %v3504_v25 = vld [vmem:[%s3115_s8 + $0x78] sm:$0xff] }
  0xdd   : > { %2216 = vmatprep.subr.bf16.mxu1 %v2777_v29  ;;  %v595_v11 = vmul.f32 0.0625, %v550_v6  ;;  %v1800_v32 = vunpack.c.l.b16 %v1099_v35  ;;  %v280_v50 = vunpack.c.h.bf16 %v3464_v43  ;;  %v1818_v49 = vsel %vm1302_vm0, %v1784_v39, %v1780_v9  ;;  %v2789_v29 = vld [vmem:[%s3733_s1 + $0x164] ss:$8 sps:$4 sm:$0xff]   ;;  %v2820_v47 = vld [vmem:[%s3733_s1 + $0xc0] ss:$8 sps:$4 sm:$0xff]   ;;  %v3528_v6 = vld [vmem:[%s3115_s8 + $0xb8] sm:$0xff] }
  0xde   : > { %2188 = vmatpush1.bf16.msra.mxu0 %v2808_v44  ;;  %v1804_v37 = vunpack.c.l.b16 %v1103_v16  ;;  %v284_v52 = vunpack.c.h.bf16 %v3472_v59  ;;  %v288_v63 = vunpack.c.h.bf16 %v3476_v51  ;;  %v1819_v58 = vsel %vm1304_vm1, %v1788_v38, %v1818_v49  ;;  %v3512_v28 = vld [vmem:[%s3115_s8 + $0x88] sm:$0xff]  ;;  %v3516_v44 = vld [vmem:[%s3115_s8 + $0x98] sm:$0xff] }
  0xdf   : > { %2189 = vmatprep.subr.bf16.mxu0 %v2816_v53  ;;  %v1107_v55 = vpack.c.bf16 %v595_v11, %v595_v11  ;;  %v292_v12 = vunpack.c.h.bf16 %v3484_v40  ;;  %v296_v57 = vunpack.c.h.bf16 %v3488_v13  ;;  %v1820_v18 = vsel %vm1306_vm2, %v1792_v22, %v1819_v58  ;;  %v3524_v62 = vld [vmem:[%s3115_s8 + $0xa8] sm:$0xff]  ;;  %v3540_v39 = vld [vmem:[%s3115_s8 + $0xd8] sm:$0xff] }
  0xe0   : > { %2217 = vmatpush1.bf16.msra.mxu1 %v2775_v8  ;;  %v300_v21 = vunpack.c.h.bf16 %v3496_v20  ;;  %v304_v26 = vunpack.c.h.bf16 %v3500_v42  ;;  %v308_v17 = vunpack.c.h.bf16 %v3504_v25  ;;  %v1821_v60 = vsel %vm1308_vm3, %v1796_v27, %v1820_v18  ;;  %v3532_v35 = vld [vmem:[%s3115_s8 + $0xc8] sm:$0xff]  ;;  %v2828_v8 = vld [vmem:[%s3733_s1 + $0xd4] ss:$8 sps:$4 sm:$0xff]  }
  0xe1   : > { %2218 = vmatprep.subr.bf16.mxu1 %v2783_v23  ;;  %v1808_v34 = vunpack.c.l.b16 %v1107_v55  ;;  %v312_v36 = vunpack.c.h.bf16 %v3512_v28  ;;  %v316_v46 = vunpack.c.h.bf16 %v3516_v44  ;;  %v1822_v48 = vsel %vm1310_vm4, %v1800_v32, %v1821_v60  ;;  %v3544_v22 = vld [vmem:[%s3115_s8 + $0xe8] sm:$0xff]  ;;  %v3548_v11 = vld [vmem:[%s3115_s8 + $0xf8] sm:$0xff]  ;;  %s2551_s8 = sshll.u32 %s2978_s18, 8  ;;  %s2991_s18 = smov [#allocation5]  }
  0xe2   : > { %2190 = vmatpush1.bf16.msra.mxu0 %v2814_v45  ;;  %v320_v53 = vunpack.c.h.bf16 %v3524_v62  ;;  %v324_v3 = vunpack.c.h.bf16 %v3528_v6  ;;  %v328_v9 = vunpack.c.h.bf16 %v3532_v35  ;;  %v1823_v16 = vsel %vm1312_vm5, %v1804_v37, %v1822_v48  ;;  %3750 = vst [vmem:[#allocation8_spill] sm:$0xff] %v3544_v22  ;;  %3751 = vst [vmem:[#allocation9_spill] sm:$0xff] %v3548_v11  ;;  %v2787_v32 = vld [vmem:[%s3733_s1 + $0x160] ss:$8 sps:$4 sm:$0xff]   ;;  %v2795_v55 = vld [vmem:[%s3733_s1 + $0x174] ss:$8 sps:$4 sm:$0xff]   ;;  %s3685_s6 = scalar_lea.hbm %s3736_s4, %s2551_s8 }
  0xe3   : > { %2191 = vmatprep.subr.bf16.mxu0 %v2822_v0  ;;  %v332_v38 = vunpack.c.h.bf16 %v3540_v39  ;;  %v336_v23 = vunpack.c.h.bf16 %v3544_v22  ;;  %v340_v27 = vunpack.c.h.bf16 %v3548_v11  ;;  %v1824_v45 = vsel %vm1314_vm6, %v1808_v34, %v1823_v16  ;;  %v2832_v16 = vld [vmem:[%s3733_s1 + $0xe0] ss:$8 sps:$4 sm:$0xff]   ;;  %s2908_s10 = sshll.u32 %s2991_s18, 4  ;;  %s2909_s10 = int_to_ptr.vmem [resolvable:$false] %s2908_s10 }
  0xe4   : > { %2219 = vmatpush1.bf16.msra.mxu1 %v2781_v19  ;;  %v362_v37 = vadd.f32 %v284_v52, %v280_v50  ;;  %v390_v49 = vadd.f32 %v292_v12, %v288_v63  ;;  %v418_v0 = vadd.f32 %v300_v21, %v296_v57  ;;  %v1840_v58 = vpack.c.b16 %v1824_v45, %v1824_v45  ;;  %v2826_v19 = vld [vmem:[%s3733_s1 + $0xd0] ss:$8 sps:$4 sm:$0xff]   ;;  %v2834_v52 = vld [vmem:[%s3733_s1 + $0xe4] ss:$8 sps:$4 sm:$0xff]   ;;  %s2910_s11 = scalar_lea.vmem %s2909_s10, 512  ;;  %p2911_p1 = scmp.lt.s32.totalorder %s3687_s5, %s2909_s10 }
  0xe5   : > { %2220 = vmatprep.subr.bf16.mxu1 %v2789_v29  ;;  %v446_v18 = vadd.f32 %v308_v17, %v304_v26  ;;  %v474_v60 = vadd.f32 %v316_v46, %v312_v36  ;;  %v502_v48 = vadd.f32 %v324_v3, %v320_v53  ;;  %v530_v50 = vadd.f32 %v332_v38, %v328_v9  ;;  %v2793_v26 = vld [vmem:[%s3733_s1 + $0x170] ss:$8 sps:$4 sm:$0xff]   ;;  %p2912_p3 = scmp.lt.s32.totalorder %s2910_s11, %s2904_s9 }
  0xe6   : > { %2192 = vmatpush1.bf16.msra.mxu0 %v2820_v47  ;;  %v363_v11 = vrot.slane %v362_v37, 4  ;;  %v391_v22 = vrot.slane %v390_v49, 4  ;;  %v419_v34 = vrot.slane %v418_v0, 4  ;;  %2199 = vmatprep.mubr.bf16.mxu0 %v1840_v58  ;;  %v558_v21 = vadd.f32 %v340_v27, %v336_v23  ;;  %v2801_v47 = vld [vmem:[%s3733_s1 + $0x184] ss:$8 sps:$4 sm:$0xff]  }
  0xe7   : > { %2193 = vmatprep.subr.bf16.mxu0 %v2828_v8  ;;  %v447_v63 = vrot.slane %v446_v18, 4  ;;  %v475_v12 = vrot.slane %v474_v60, 4  ;;  %v503_v57 = vrot.slane %v502_v48, 4  ;;  %v531_v46 = vrot.slane %v530_v50, 4  ;;  %v2840_v27 = vld [vmem:[%s3733_s1 + $0xf4] ss:$8 sps:$4 sm:$0xff]   ;;  %p2913_p5 = por %p2912_p3, %p2911_p1 }
  0xe8   : > { %2221 = vmatpush1.bf16.msra.mxu1 %v2787_v32  ;;  %v364_v17 = vadd.f32 %v363_v11, %v362_v37  ;;  %v392_v29 = vadd.f32 %v391_v22, %v390_v49  ;;  %v420_v36 = vadd.f32 %v419_v34, %v418_v0  ;;  %v559_v8 = vrot.slane %v558_v21, 4  ;;  %v2799_v0 = vld [vmem:[%s3733_s1 + $0x180] ss:$8 sps:$4 sm:$0xff]  }
  0xe9   : > { %2222 = vmatprep.subr.bf16.mxu1 %v2795_v55  ;;  %v448_v53 = vadd.f32 %v447_v63, %v446_v18  ;;  %v476_v3 = vadd.f32 %v475_v12, %v474_v60  ;;  %v504_v9 = vadd.f32 %v503_v57, %v502_v48  ;;  %v532_v22 = vadd.f32 %v531_v46, %v530_v50  ;;  %v2807_v48 = vld [vmem:[%s3733_s1 + $0x194] ss:$8 sps:$4 sm:$0xff]   ;;  %v2838_v63 = vld [vmem:[%s3733_s1 + $0xf0] ss:$8 sps:$4 sm:$0xff]   ;;  %p2914_p6 = pnand %p2913_p5, %p2907_p13 }
  0xea   : > { %2194 = vmatpush1.bf16.msra.mxu0 %v2826_v19  ;;  %v365_v38 = vrot.slane %v364_v17, 2  ;;  %v393_v23 = vrot.slane %v392_v29, 2  ;;  %v421_v11 = vrot.slane %v420_v36, 2  ;;  %v560_v49 = vadd.f32 %v559_v8, %v558_v21 }
  0xeb   : > { %2195 = vmatprep.subr.bf16.mxu0 %v2834_v52  ;;  %v449_v32 = vrot.slane %v448_v53, 2  ;;  %v477_v45 = vrot.slane %v476_v3, 2  ;;  %v505_v37 = vrot.slane %v504_v9, 2  ;;  %v533_v60 = vrot.slane %v532_v22, 2 }
  0xec   : > { %2223 = vmatpush1.bf16.msra.mxu1 %v2793_v26  ;;  %v366_v55 = vadd.f32 %v365_v38, %v364_v17  ;;  %v394_v58 = vadd.f32 %v393_v23, %v392_v29  ;;  %v422_v18 = vadd.f32 %v421_v11, %v420_v36  ;;  %v561_v52 = vrot.slane %v560_v49, 2 }
  0xed   : > { %2224 = vmatprep.subr.bf16.mxu1 %v2801_v47  ;;  %v450_v19 = vadd.f32 %v449_v32, %v448_v53  ;;  %v478_v34 = vadd.f32 %v477_v45, %v476_v3  ;;  %v506_v50 = vadd.f32 %v505_v37, %v504_v9  ;;  %v534_v26 = vadd.f32 %v533_v60, %v532_v22  ;;  %v2805_v47 = vld [vmem:[%s3733_s1 + $0x190] ss:$8 sps:$4 sm:$0xff]  }
  0xee   : > { %2196 = vmatpush1.bf16.msra.mxu0 %v2832_v16  ;;  %v367_v12 = vrot.slane %v366_v55, 1  ;;  %v395_v57 = vrot.slane %v394_v58, 1  ;;  %v423_v21 = vrot.slane %v422_v18, 1  ;;  %v562_v46 = vadd.f32 %v561_v52, %v560_v49  ;;  %v2813_v16 = vld [vmem:[%s3733_s1 + $0x1a4] ss:$8 sps:$4 sm:$0xff]  }
  0xef   : > { %2197 = vmatprep.subr.bf16.mxu0 %v2840_v27  ;;  %v451_v17 = vrot.slane %v450_v19, 1  ;;  %v479_v29 = vrot.slane %v478_v34, 1  ;;  %v507_v36 = vrot.slane %v506_v50, 1  ;;  %v535_v8 = vrot.slane %v534_v26, 1 }
  0xf0   : > { %2225 = vmatpush1.bf16.msra.mxu1 %v2799_v0  ;;  %v368_v53 = vadd.f32 %v367_v12, %v366_v55  ;;  %v396_v3 = vadd.f32 %v395_v57, %v394_v58  ;;  %v424_v9 = vadd.f32 %v423_v21, %v422_v18  ;;  %v563_v22 = vrot.slane %v562_v46, 1  ;;  %v2811_v18 = vld [vmem:[%s3733_s1 + $0x1a0] ss:$8 sps:$4 sm:$0xff]  }
  0xf1   : > { %2226 = vmatprep.subr.bf16.mxu1 %v2807_v48  ;;  %v452_v38 = vadd.f32 %v451_v17, %v450_v19  ;;  %v480_v23 = vadd.f32 %v479_v29, %v478_v34  ;;  %v508_v11 = vadd.f32 %v507_v36, %v506_v50  ;;  %v536_v27 = vadd.f32 %v535_v8, %v534_v26  ;;  %v2819_v50 = vld [vmem:[%s3733_s1 + $0x1b4] ss:$8 sps:$4 sm:$0xff]  }
  0xf2   : > { %2198 = vmatpush1.bf16.msra.mxu0 %v2838_v63  ;;  %v569_v32 = vmul.f32 0.0625, %v368_v53  ;;  %v573_v45 = vmul.f32 0.0625, %v396_v3  ;;  %v577_v37 = vmul.f32 0.0625, %v424_v9  ;;  %v564_v49 = vadd.f32 %v563_v22, %v562_v46  ;;  %v2817_v3 = vld [vmem:[%s3733_s1 + $0x1b0] ss:$8 sps:$4 sm:$0xff]  }
  0xf3   : > { %v581_v0 = vmul.f32 0.0625, %v452_v38  ;;  %v585_v55 = vmul.f32 0.0625, %v480_v23  ;;  %v589_v58 = vmul.f32 0.0625, %v508_v11  ;;  %v593_v60 = vmul.f32 0.0625, %v536_v27  ;;  %v2825_v23 = vld [vmem:[%s3733_s1 + $0x1c4] ss:$8 sps:$4 sm:$0xff]  }
  0xf4   : > { %2227 = vmatpush1.bf16.msra.mxu1 %v2805_v47  ;;  %v1081_v48 = vpack.c.bf16 %v569_v32, %v569_v32  ;;  %v1085_v19 = vpack.c.bf16 %v573_v45, %v573_v45  ;;  %v1089_v34 = vpack.c.bf16 %v577_v37, %v577_v37  ;;  %v597_v52 = vmul.f32 0.0625, %v564_v49 }
  0xf5   : > { %2228 = vmatprep.subr.bf16.mxu1 %v2813_v16  ;;  %v1093_v63 = vpack.c.bf16 %v581_v0, %v581_v0  ;;  %v1097_v12 = vpack.c.bf16 %v585_v55, %v585_v55  ;;  %v1101_v57 = vpack.c.bf16 %v589_v58, %v589_v58  ;;  %v1105_v21 = vpack.c.bf16 %v593_v60, %v593_v60 }
  0xf6   : > { %v1782_v26 = vunpack.c.l.b16 %v1081_v48  ;;  %v1786_v17 = vunpack.c.l.b16 %v1085_v19  ;;  %v1790_v29 = vunpack.c.l.b16 %v1089_v34  ;;  %v1109_v36 = vpack.c.bf16 %v597_v52, %v597_v52 }
  0xf7   : > { %v1794_v46 = vunpack.c.l.b16 %v1093_v63  ;;  %v1798_v47 = vunpack.c.l.b16 %v1097_v12  ;;  %v1802_v53 = vunpack.c.l.b16 %v1101_v57  ;;  %v1806_v9 = vunpack.c.l.b16 %v1105_v21  ;;  %v2829_v63 = vld [vmem:[%s3733_s1 + $0x1d0] ss:$8 sps:$4 sm:$0xff]  }
  0xf8   : > { %2229 = vmatpush1.bf16.msra.mxu1 %v2811_v18  ;;  %v1832_v8 = vsel %vm1302_vm0, %v1786_v17, %v1782_v26  ;;  %v277_v16 = vunpack.c.l.bf16 %v3321_v33  ;;  %v281_v38 = vunpack.c.l.bf16 %v3329_v1  ;;  %v1810_v11 = vunpack.c.l.b16 %v1109_v36 }
  0xf9   : > { %2230 = vmatprep.subr.bf16.mxu1 %v2819_v50  ;;  %v1833_v22 = vsel %vm1304_vm1, %v1790_v29, %v1832_v8  ;;  %v285_v27 = vunpack.c.l.bf16 %v3337_v14  ;;  %v289_v32 = vunpack.c.l.bf16 %v3342_v24  ;;  %v293_v37 = vunpack.c.l.bf16 %v3347_v31  ;;  %v2823_v14 = vld [vmem:[%s3733_s1 + $0x1c0] ss:$8 sps:$4 sm:$0xff]  }
  0xfa   : > { %v1834_v45 = vsel %vm1306_vm2, %v1794_v46, %v1833_v22  ;;  %v297_v33 = vunpack.c.l.bf16 %v3351_v30  ;;  %v301_v1 = vunpack.c.l.bf16 %v3359_v41  ;;  %v305_v0 = vunpack.c.l.bf16 %v3363_v61  ;;  %v2831_v61 = vld [vmem:[%s3733_s1 + $0x1d4] ss:$8 sps:$4 sm:$0xff]  }
  0xfb   : > { %v1835_v49 = vsel %vm1308_vm3, %v1798_v47, %v1834_v45  ;;  %v309_v55 = vunpack.c.l.bf16 %v3370_v2  ;;  %v313_v58 = vunpack.c.l.bf16 %v3374_v5  ;;  %v317_v31 = vunpack.c.l.bf16 %v3378_v54 }
  0xfc   : > { %2231 = vmatpush1.bf16.msra.mxu1 %v2817_v3  ;;  %v1836_v24 = vsel %vm1310_vm4, %v1802_v53, %v1835_v49  ;;  %v321_v30 = vunpack.c.l.bf16 %v3382_v4  ;;  %v325_v41 = vunpack.c.l.bf16 %v3386_v7  ;;  %v329_v5 = vunpack.c.l.bf16 %v3390_v15 }
  0xfd   : > { %2232 = vmatprep.subr.bf16.mxu1 %v2825_v23  ;;  %v1837_v2 = vsel %vm1312_vm5, %v1806_v9, %v1836_v24  ;;  %v333_v18 = vunpack.c.l.bf16 %v3395_v56  ;;  %v337_v60 = vunpack.c.l.bf16 %v3399_v10  ;;  %v341_v54 = vadd.f32 %v281_v38, %v277_v16  ;;  %v2837_v10 = vld [vmem:[%s3733_s1 + $0x1e4] ss:$8 sps:$4 sm:$0xff]   ;;  %v2835_v38 = vld [vmem:[%s3733_s1 + $0x1e0] ss:$8 sps:$4 sm:$0xff]  }
  0xfe   : > { %v1838_v48 = vsel %vm1314_vm6, %v1810_v11, %v1837_v2  ;;  %v369_v19 = vadd.f32 %v289_v32, %v285_v27  ;;  %v397_v4 = vadd.f32 %v297_v33, %v293_v37  ;;  %v425_v7 = vadd.f32 %v305_v0, %v301_v1  ;;  %v2843_v32 = vld [vmem:[%s3733_s1 + $0x1f4] ss:$8 sps:$4 sm:$0xff]  }
  0xff   : > { %v1842_v34 = vpack.c.b16 %v1838_v48, %v1838_v48  ;;  %v453_v50 = vadd.f32 %v313_v58, %v309_v55  ;;  %v481_v52 = vadd.f32 %v321_v30, %v317_v31  ;;  %v342_v12 = vrot.slane %v341_v54, 4 }
 0x100   : > { %2233 = vmatpush1.bf16.msra.mxu1 %v2823_v14  ;;  %v370_v15 = vrot.slane %v369_v19, 4  ;;  %v398_v57 = vrot.slane %v397_v4, 4  ;;  %v509_v56 = vadd.f32 %v329_v5, %v325_v41  ;;  %v426_v21 = vrot.slane %v425_v7, 4  ;;  %v2841_v41 = vld [vmem:[%s3733_s1 + $0x1f0] ss:$8 sps:$4 sm:$0xff]  }
 0x101   : > { %2234 = vmatprep.subr.bf16.mxu1 %v2831_v61  ;;  %2240 = vmatprep.mubr.bf16.mxu1 %v1842_v34  ;;  %v454_v26 = vrot.slane %v453_v50, 4  ;;  %v482_v17 = vrot.slane %v481_v52, 4  ;;  %v537_v29 = vadd.f32 %v337_v60, %v333_v18  ;;  %v343_v36 = vadd.f32 %v342_v12, %v341_v54 }
 0x102   : > { %v371_v46 = vadd.f32 %v370_v15, %v369_v19  ;;  %v399_v47 = vadd.f32 %v398_v57, %v397_v4  ;;  %v510_v53 = vrot.slane %v509_v56, 4  ;;  %v427_v3 = vadd.f32 %v426_v21, %v425_v7 }
 0x103   : > { %v455_v9 = vadd.f32 %v454_v26, %v453_v50  ;;  %v483_v8 = vadd.f32 %v482_v17, %v481_v52  ;;  %v538_v16 = vrot.slane %v537_v29, 4  ;;  %v344_v23 = vrot.slane %v343_v36, 2 }
 0x104   : > { %2235 = vmatpush1.bf16.msra.mxu1 %v2829_v63  ;;  %v372_v11 = vrot.slane %v371_v46, 2  ;;  %v400_v22 = vrot.slane %v399_v47, 2  ;;  %v511_v27 = vadd.f32 %v510_v53, %v509_v56  ;;  %v428_v45 = vrot.slane %v427_v3, 2 }
 0x105   : > { %2236 = vmatprep.subr.bf16.mxu1 %v2837_v10  ;;  %v456_v37 = vrot.slane %v455_v9, 2  ;;  %v484_v33 = vrot.slane %v483_v8, 2  ;;  %v539_v1 = vadd.f32 %v538_v16, %v537_v29  ;;  %v345_v49 = vadd.f32 %v344_v23, %v343_v36 }
 0x106   : > { %v373_v0 = vadd.f32 %v372_v11, %v371_v46  ;;  %v401_v55 = vadd.f32 %v400_v22, %v399_v47  ;;  %v512_v58 = vrot.slane %v511_v27, 2  ;;  %v429_v14 = vadd.f32 %v428_v45, %v427_v3 }
 0x107   : > { %v457_v24 = vadd.f32 %v456_v37, %v455_v9  ;;  %v485_v31 = vadd.f32 %v484_v33, %v483_v8  ;;  %v540_v30 = vrot.slane %v539_v1, 2  ;;  %v346_v61 = vrot.slane %v345_v49, 1 }
 0x108   : > { %2237 = vmatpush1.bf16.msra.mxu1 %v2835_v38  ;;  %v374_v2 = vrot.slane %v373_v0, 1  ;;  %v402_v5 = vrot.slane %v401_v55, 1  ;;  %v513_v18 = vadd.f32 %v512_v58, %v511_v27  ;;  %v430_v60 = vrot.slane %v429_v14, 1 }
 0x109   : > { %2238 = vmatprep.subr.bf16.mxu1 %v2843_v32  ;;  %v458_v48 = vrot.slane %v457_v24, 1  ;;  %v486_v54 = vrot.slane %v485_v31, 1  ;;  %v541_v19 = vadd.f32 %v540_v30, %v539_v1  ;;  %v347_v4 = vadd.f32 %v346_v61, %v345_v49 }
 0x10a   : > { %v375_v34 = vadd.f32 %v374_v2, %v373_v0  ;;  %v403_v7 = vadd.f32 %v402_v5, %v401_v55  ;;  %v514_v50 = vrot.slane %v513_v18, 1  ;;  %v431_v52 = vadd.f32 %v430_v60, %v429_v14 }
 0x10b   : > { %v459_v63 = vadd.f32 %v458_v48, %v457_v24  ;;  %v487_v12 = vadd.f32 %v486_v54, %v485_v31  ;;  %v542_v15 = vrot.slane %v541_v19, 1  ;;  %v566_v56 = vmul.f32 0.0625, %v347_v4  ;;  %v3752_v48 = vld [vmem:[#allocation8_spill] sm:$0xff] }
 0x10c   : > { %2239 = vmatpush1.bf16.msra.mxu1 %v2841_v41  ;;  %v515_v57 = vadd.f32 %v514_v50, %v513_v18  ;;  %v570_v10 = vmul.f32 0.0625, %v375_v34  ;;  %v574_v21 = vmul.f32 0.0625, %v403_v7  ;;  %v578_v17 = vmul.f32 0.0625, %v431_v52 }
 0x10d   : > { %v543_v26 = vadd.f32 %v542_v15, %v541_v19  ;;  %v582_v29 = vmul.f32 0.0625, %v459_v63  ;;  %v586_v36 = vmul.f32 0.0625, %v487_v12  ;;  %v1078_v47 = vpack.c.bf16 %v566_v56, %v566_v56  ;;  %v3753_v19 = vld [vmem:[#allocation9_spill] sm:$0xff] }
 0x10e   : > { %v590_v46 = vmul.f32 0.0625, %v515_v57  ;;  %v1082_v53 = vpack.c.bf16 %v570_v10, %v570_v10  ;;  %v1086_v3 = vpack.c.bf16 %v574_v21, %v574_v21  ;;  %v1090_v8 = vpack.c.bf16 %v578_v17, %v578_v17 }
 0x10f   : > { %v594_v9 = vmul.f32 0.0625, %v543_v26  ;;  %v1094_v16 = vpack.c.bf16 %v582_v29, %v582_v29  ;;  %v1098_v38 = vpack.c.bf16 %v586_v36, %v586_v36  ;;  %v1779_v11 = vunpack.c.l.b16 %v1078_v47 }
 0x110   : > { %v1102_v23 = vpack.c.bf16 %v590_v46, %v590_v46  ;;  %v1783_v22 = vunpack.c.l.b16 %v1082_v53  ;;  %v1787_v27 = vunpack.c.l.b16 %v1086_v3  ;;  %v1791_v45 = vunpack.c.l.b16 %v1090_v8 }
 0x111   : > { %v1106_v32 = vpack.c.bf16 %v594_v9, %v594_v9  ;;  %v1795_v37 = vunpack.c.l.b16 %v1094_v16  ;;  %v1799_v33 = vunpack.c.l.b16 %v1098_v38  ;;  %v279_v0 = vunpack.c.l.bf16 %v3464_v43 }
 0x112   : > { %v1803_v1 = vunpack.c.l.b16 %v1102_v23  ;;  %v1811_v49 = vsel %vm1302_vm0, %v1783_v22, %v1779_v11  ;;  %v283_v55 = vunpack.c.l.bf16 %v3472_v59  ;;  %v287_v24 = vunpack.c.l.bf16 %v3476_v51 }
 0x113   : > { %v1807_v58 = vunpack.c.l.b16 %v1106_v32  ;;  %v1812_v14 = vsel %vm1304_vm1, %v1787_v27, %v1811_v49  ;;  %v291_v31 = vunpack.c.l.bf16 %v3484_v40  ;;  %v295_v41 = vunpack.c.l.bf16 %v3488_v13 }
 0x114   : > { %v1813_v30 = vsel %vm1306_vm2, %v1791_v45, %v1812_v14  ;;  %v299_v61 = vunpack.c.l.bf16 %v3496_v20  ;;  %v303_v2 = vunpack.c.l.bf16 %v3500_v42  ;;  %v307_v43 = vunpack.c.l.bf16 %v3504_v25 }
 0x115   : > { %v1814_v5 = vsel %vm1308_vm3, %v1795_v37, %v1813_v30  ;;  %v311_v59 = vunpack.c.l.bf16 %v3512_v28  ;;  %v315_v18 = vunpack.c.l.bf16 %v3516_v44  ;;  %v319_v40 = vunpack.c.l.bf16 %v3524_v62 }
 0x116   : > { %v1815_v51 = vsel %vm1310_vm4, %v1799_v33, %v1814_v5  ;;  %v323_v60 = vunpack.c.l.bf16 %v3528_v6  ;;  %v327_v13 = vunpack.c.l.bf16 %v3532_v35  ;;  %v331_v42 = vunpack.c.l.bf16 %v3540_v39 }
 0x117   : > { %v1816_v20 = vsel %vm1312_vm5, %v1803_v1, %v1815_v51  ;;  %v335_v54 = vunpack.c.l.bf16 %v3752_v48  ;;  %v339_v25 = vunpack.c.l.bf16 %v3753_v19  ;;  %v355_v4 = vadd.f32 %v283_v55, %v279_v0 }
 0x118   : > { %v1817_v28 = vsel %vm1314_vm6, %v1807_v58, %v1816_v20  ;;  %v383_v44 = vadd.f32 %v291_v31, %v287_v24  ;;  %v411_v34 = vadd.f32 %v299_v61, %v295_v41  ;;  %v439_v50 = vadd.f32 %v307_v43, %v303_v2 }
 0x119   : > { %v1839_v7 = vpack.c.b16 %v1817_v28, %v1817_v28  ;;  %v467_v62 = vadd.f32 %v315_v18, %v311_v59  ;;  %v495_v52 = vadd.f32 %v323_v60, %v319_v40  ;;  %v356_v6 = vrot.slane %v355_v4, 4 }
 0x11a   : > { %v384_v63 = vrot.slane %v383_v44, 4  ;;  %v412_v35 = vrot.slane %v411_v34, 4  ;;  %v523_v12 = vadd.f32 %v331_v42, %v327_v13  ;;  %v440_v15 = vrot.slane %v439_v50, 4 }
 0x11b   : > { %2200 = vmatmul.mubr.bf16.vlgmr.msra.gmra.mrb[4].mxu0 %v1839_v7  ;;  %v468_v39 = vrot.slane %v467_v62, 4  ;;  %v496_v57 = vrot.slane %v495_v52, 4  ;;  %v551_v56 = vadd.f32 %v339_v25, %v335_v54  ;;  %v357_v10 = vadd.f32 %v356_v6, %v355_v4 }
 0x11c   : > { %v385_v21 = vadd.f32 %v384_v63, %v383_v44  ;;  %v413_v26 = vadd.f32 %v412_v35, %v411_v34  ;;  %v524_v17 = vrot.slane %v523_v12, 4  ;;  %v441_v29 = vadd.f32 %v440_v15, %v439_v50 }
 0x11d   : > { %v469_v36 = vadd.f32 %v468_v39, %v467_v62  ;;  %v497_v46 = vadd.f32 %v496_v57, %v495_v52  ;;  %v552_v47 = vrot.slane %v551_v56, 4  ;;  %v358_v53 = vrot.slane %v357_v10, 2 }
 0x11e   : > { %v386_v3 = vrot.slane %v385_v21, 2  ;;  %v414_v9 = vrot.slane %v413_v26, 2  ;;  %v525_v8 = vadd.f32 %v524_v17, %v523_v12  ;;  %v442_v16 = vrot.slane %v441_v29, 2 }
 0x11f   : > { %v470_v38 = vrot.slane %v469_v36, 2  ;;  %v498_v23 = vrot.slane %v497_v46, 2  ;;  %v553_v11 = vadd.f32 %v552_v47, %v551_v56  ;;  %v359_v22 = vadd.f32 %v358_v53, %v357_v10 }
 0x120   : > { %v387_v27 = vadd.f32 %v386_v3, %v385_v21  ;;  %v415_v32 = vadd.f32 %v414_v9, %v413_v26  ;;  %v526_v45 = vrot.slane %v525_v8, 2  ;;  %v443_v37 = vadd.f32 %v442_v16, %v441_v29 }
 0x121   : > { %v471_v33 = vadd.f32 %v470_v38, %v469_v36  ;;  %v499_v1 = vadd.f32 %v498_v23, %v497_v46  ;;  %v554_v49 = vrot.slane %v553_v11, 2  ;;  %v360_v0 = vrot.slane %v359_v22, 1 }
 0x122   : > { %v388_v55 = vrot.slane %v387_v27, 1  ;;  %v416_v58 = vrot.slane %v415_v32, 1  ;;  %v527_v14 = vadd.f32 %v526_v45, %v525_v8  ;;  %v444_v24 = vrot.slane %v443_v37, 1 }
 0x123   : > { %v472_v31 = vrot.slane %v471_v33, 1  ;;  %v500_v30 = vrot.slane %v499_v1, 1  ;;  %v555_v41 = vadd.f32 %v554_v49, %v553_v11  ;;  %v361_v61 = vadd.f32 %v360_v0, %v359_v22 }
 0x124   : > { %v389_v2 = vadd.f32 %v388_v55, %v387_v27  ;;  %v417_v5 = vadd.f32 %v416_v58, %v415_v32  ;;  %v528_v43 = vrot.slane %v527_v14, 1  ;;  %v445_v59 = vadd.f32 %v444_v24, %v443_v37 }
 0x125   : > { %v473_v18 = vadd.f32 %v472_v31, %v471_v33  ;;  %v501_v51 = vadd.f32 %v500_v30, %v499_v1  ;;  %v556_v40 = vrot.slane %v555_v41, 1  ;;  %v568_v13 = vmul.f32 0.0625, %v361_v61  ;;  %v2249_v31 = vld [vmem:[%s3735_s3] sm:$0x3] }
 0x126   : > { %v529_v60 = vadd.f32 %v528_v43, %v527_v14  ;;  %v572_v20 = vmul.f32 0.0625, %v389_v2  ;;  %v576_v42 = vmul.f32 0.0625, %v417_v5  ;;  %v580_v54 = vmul.f32 0.0625, %v445_v59 }
 0x127   : > { %v557_v48 = vadd.f32 %v556_v40, %v555_v41  ;;  %v584_v19 = vmul.f32 0.0625, %v473_v18  ;;  %v588_v25 = vmul.f32 0.0625, %v501_v51  ;;  %v1080_v4 = vpack.c.bf16 %v568_v13, %v568_v13 }
 0x128   : > { %v592_v28 = vmul.f32 0.0625, %v529_v60  ;;  %v1084_v44 = vpack.c.bf16 %v572_v20, %v572_v20  ;;  %v1088_v34 = vpack.c.bf16 %v576_v42, %v576_v42  ;;  %v1092_v50 = vpack.c.bf16 %v580_v54, %v580_v54 }
 0x129   : > { %v596_v7 = vmul.f32 0.0625, %v557_v48  ;;  %v1096_v62 = vpack.c.bf16 %v584_v19, %v584_v19  ;;  %v1100_v52 = vpack.c.bf16 %v588_v25, %v588_v25  ;;  %v1781_v63 = vunpack.c.l.b16 %v1080_v4 }
 0x12a   : > { %v1104_v6 = vpack.c.bf16 %v592_v28, %v592_v28  ;;  %v1785_v35 = vunpack.c.l.b16 %v1084_v44  ;;  %v1789_v12 = vunpack.c.l.b16 %v1088_v34  ;;  %v1793_v39 = vunpack.c.l.b16 %v1092_v50 }
 0x12b   : > { %v1108_v15 = vpack.c.bf16 %v596_v7, %v596_v7  ;;  %v1797_v57 = vunpack.c.l.b16 %v1096_v62  ;;  %v1801_v56 = vunpack.c.l.b16 %v1100_v52  ;;  %v2251_v58 = vlaneseq }
 0x12c   : > { %v1825_v10 = vsel %vm1302_vm0, %v1785_v35, %v1781_v63  ;;  %v1805_v21 = vunpack.c.l.b16 %v1104_v6 }
 0x12d   : > { %v1826_v26 = vsel %vm1304_vm1, %v1789_v12, %v1825_v10  ;;  %v1809_v17 = vunpack.c.l.b16 %v1108_v15  ;;  %v2252_v14 = vshrl.u32 %v2251_v58, 7 }
 0x12e   : > { %v1827_v29 = vsel %vm1306_vm2, %v1793_v39, %v1826_v26 }
 0x12f   : > { %v1828_v36 = vsel %vm1308_vm3, %v1797_v57, %v1827_v29  ;;  %v2253_v24 = vsub.s32 0, %v2252_v14  ;;  %v2257_v30 = vsub.s32 1, %v2252_v14 }
 0x130   : > { %v1829_v46 = vsel %vm1310_vm4, %v1801_v56, %v1828_v36 }
 0x131   : > { %v1830_v47 = vsel %vm1312_vm5, %v1805_v21, %v1829_v46  ;;  %v2254_v41 = vrot.slane %v2249_v31, %v2253_v24  ;;  %v2258_v2 = vrot.slane %v2249_v31, %v2257_v30 }
 0x132   : > { %v1831_v53 = vsel %vm1314_vm6, %v1809_v17, %v1830_v47 }
 0x133   : > { %v1841_v3 = vpack.c.b16 %v1831_v53, %v1831_v53 }
 0x135   : > { %2241 = vmatmul.mubr.bf16.vlgmr.msra.gmra.mrb[4].mxu1 %v1841_v3 }
 0x188   : > { %v1699_v9 = vpop.f32.mrb[0].mxu0 }
 0x189   : > { %v1701_v8 = vpop.f32.mrb[1].mxu0 }
 0x18a   : > { %v1703_v16 = vpop.f32.mrb[2].mxu0 }
 0x18b   : > { %v1704_v38 = vpop.f32.mrb[3].mxu0 }
 0x1a2   : > { %v1740_v23 = vpop.f32.mrb[0].mxu1 }
 0x1a3   : > { %v1741_v11 = vadd.f32 %v1740_v23, %v1699_v9  ;;  %v1742_v22 = vpop.f32.mrb[1].mxu1 }
 0x1a4   : > { %v1743_v27 = vadd.f32 %v1742_v22, %v1701_v8  ;;  %v1744_v32 = vpop.f32.mrb[2].mxu1 }
 0x1a5   : > { %v1745_v45 = vpop.f32.mrb[3].mxu1 }
 0x1ee   : > { %v2201_v37 = vpop.f32.mrb[4].mxu0 }
 0x1ef   : > { %v2202_v33 = vadd.f32 %v2201_v37, %v1741_v11  ;;  %v2203_v1 = vpop.f32.mrb[5].mxu0 }
 0x1f0   : > { %v2204_v49 = vadd.f32 %v2203_v1, %v1743_v27  ;;  %v2205_v0 = vpop.f32.mrb[6].mxu0 }
 0x1f1   : > { %v2206_v55 = vpop.f32.mrb[7].mxu0 }
 0x208   : > { %v2242_v61 = vpop.f32.mrb[4].mxu1 }
 0x209   : > { %v2243_v5 = vadd.f32 %v2242_v61, %v2202_v33  ;;  %v2244_v43 = vpop.f32.mrb[5].mxu1 }
 0x20a   : > { %v2245_v59 = vadd.f32 %v2244_v43, %v2204_v49  ;;  %v2246_v18 = vpop.f32.mrb[6].mxu1 }
 0x20b   : > { %v2261_v51 = vadd.f32 %v2254_v41, %v2243_v5  ;;  %v2247_v40 = vpop.f32.mrb[7].mxu1 }
 0x20c   : > { %v2262_v60 = vadd.f32 %v2258_v2, %v2245_v59 }
 0x20d   : > { %v2263_v13 = vmax.f32 %v2261_v51, 0.0 }
 0x20e   : > { %v2264_v20 = vmax.f32 %v2262_v60, 0.0 }
 0x20f   : > { %2265 = vst [vmem:[%s232_s26] sm:$0xff] %v2263_v13 }
 0x210   : > { %2266 = vst [vmem:[%s232_s26 + $0x8] sm:$0xff] %v2264_v20 }
 0x211   : > { %2917 = shalt.err (!%p2914_p6)
}
 0x212   : > { %s2918_s12 = scalar_lea.hbm %s3685_s6, 256  ;;  %s2922_s21 = scalar_lea.hbm %s3736_s4, 512 }
 0x213   : > { %p2919_p7 = scmp.ne.s32.totalorder %s3685_s6, %s2918_s12  ;;  %p2923_p0 = scmp.lt.u32.totalorder %s3685_s6, %s3736_s4 }
 0x214   : > { %p2924_p2 = scmp.lt.u32.totalorder %s2922_s21, %s2918_s12  ;;  %p2926_p8 = scmp.lt.u32.totalorder %s2918_s12, %s3685_s6 }
 0x215   : > { %p2920_p9 = pnand %p2919_p7, %p3754_p10 }
 0x216   : > { %p2925_p4 = por %p2924_p2, %p2923_p0 }
 0x217   : > { %p2921_p12 = pneg %p2920_p9 }
 0x218   : > { %p2927_p11 = por %p2926_p8, %p2925_p4 }
 0x21a   : > { %p2928_p13 = pnand %p2927_p11, %p2921_p12 }
 0x21c   : > { %2931 = shalt.err (!%p2928_p13)
}
 0x21d   : > { %2556 = dma.vmem_to_hbm [thread:$0]  (%p3754_p10), %s3687_s5, 256, %s3685_s6, %s2268_s7  }
 0x21e PF: > { %p2568_p1 = scmp.ge.s32.totalorder %s2986_s20, 2  ;;  %s2296_s8 = sand.u32 1, %s2966_s15  }
 0x21f   : > { %p3755_p3 = scmp.ne.s32.totalorder %s3744_s27, 0  ;;  %s2297_s26 = scalar_lea.sflag [#allocation4], %s2296_s8 }
 0x221   : > { %p2563_p5 = pnand %p2568_p1, %p3755_p3 }
 0x223   : > { %2961 = dma.done.wait (!%p2563_p5), %s2297_s26, 256  }
 0x224   : > { %2963 = vsyncadd (!%p2563_p5), %s2297_s26, 4294967040  ;;  %s18_s20 = sadd.s32 1, %s2986_s20   ;;  %s3756_s15 = smov %s2970_s16 }
 0x225   : > { %p15_p6 = scmp.ge.s32.totalorder %s18_s20, 4   ;;  %s3757_s16 = smov %s2974_s17 }
 0x226   : > { %s3758_s17 = smov %s3070_s28  ;;  %s3759_s18 = smov %s2982_s19 }
 0x227   : > { %s3760_s19 = smov %s3762_s23  ;;  %17 = sbr.rel (!%p15_p6) target bundleno = 5 (0x5), region = 76 }
 0x22e   :  { %2302 = vsyncpa [#allocation3], 1 }
 0x22f   :  { %2304 = vsyncpa [#allocation3 + $0x1], 1 }
 0x230   :  { %2305 = vsyncpa [#allocation4], 1 }
 0x231   :  { %2307 = vsyncpa [#allocation4 + $0x1], 1 }

</bundles_post_ra>
